<compile_context>
chip_gen: v6e
topology: v6e:2x2x1
jax: 0.10.0
libtpu: 0.0.40
codegen_flags: <defaults>
</compile_context>

<pallas_src>
import functools
import math

import jax
import jax.numpy as jnp
import numpy as np
from jax.experimental import pallas as pl
from jax.experimental.pallas import tpu as pltpu


# ---------------------------------------------------------------- helpers ---
def _silu(x):
    return x * jax.nn.sigmoid(x)


def _softplus(x):
    # matches torch.nn.functional.softplus (threshold=20)
    return jnp.where(x > 20.0, x, jnp.log1p(jnp.exp(x)))


# ----------------------------------------------------------------- kernel ---
def mamba_block_kernel(
    x_ref,        # (1, TL, D_in)       f32 input tile
    w_in_x_ref,   # (D_in, D_inner)     input_proj x-half, pre-transposed (cdt)
    w_in_z_ref,   # (D_in, D_inner)     input_proj z-half, pre-transposed (cdt)
    w_conv_ref,   # (k, D_inner)        depthwise conv taps (f32)
    b_conv_ref,   # (1, D_inner)        conv bias (f32)
    w_dtlr_ref,   # (D_inner, R)        selective_proj dt-part (cdt)
    w_bc_ref,     # (D_inner, 2N)       selective_proj merged B|C (cdt)
    w_dt_ref,     # (R, D_inner)        dt_proj weight, pre-transposed (cdt)
    b_dt_ref,     # (1, D_inner)        dt_proj bias / delta_bias (f32)
    a_ref,        # (N, D_inner)        A = -exp(A_log), pre-transposed (f32)
    d_ref,        # (1, D_inner)        skip D (f32)
    w_out_ref,    # (D_inner, D_in)     output_proj weight, pre-transposed (cdt)
    o_ref,        # (1, TL, D_in)       f32 output tile
    conv_scr,     # VMEM (TL+k-1, D_inner) padded conv window (carries tail)
    h_scr,        # VMEM (N, D_inner)      SSM state carried across seq tiles
    dt_scr,       # VMEM (TL, D_inner)
    u_scr,        # VMEM (TL, D_inner)
    bc_scr,       # VMEM (TL, 2N)
    y_scr,        # VMEM (TL, D_inner)
    *,
    tl, d_inner, d_state, k, chunk, compute_dtype,
):
    l = pl.program_id(1)
    cdt = compute_dtype

    # ---- reset carried state at the start of each batch element -----------
    @pl.when(l == 0)
    def _init():
        h_scr[...] = jnp.zeros_like(h_scr)
        if k > 1:
            conv_scr[0:k - 1, :] = jnp.zeros((k - 1, d_inner), jnp.float32)

    x = x_ref[0].astype(cdt)                                        # (TL, D_in)

    # ---- input projection: split x / z halves (no lane-offset slicing) ----
    xs = jnp.dot(x, w_in_x_ref[...], preferred_element_type=jnp.float32)
    z = jnp.dot(x, w_in_z_ref[...], preferred_element_type=jnp.float32)

    # ---- depthwise causal conv1d via padded VMEM window (k pl.ds reads) ---
    conv_scr[k - 1:k - 1 + tl, :] = xs
    xc = jnp.broadcast_to(b_conv_ref[...], (tl, d_inner))
    for j in range(k):
        xc = xc + w_conv_ref[j:j + 1, :] * conv_scr[pl.ds(j, tl), :]
    if k > 1:
        # carry the last (k-1) rows of this tile's xs to the next tile
        conv_scr[0:k - 1, :] = conv_scr[tl:tl + k - 1, :]
    u = _silu(xc)                                                   # (TL, D_inner)
    u_scr[...] = u

    # ---- selective projections (dt low-rank + merged B|C) -----------------
    u_c = u.astype(cdt)
    dt_lr = jnp.dot(u_c, w_dtlr_ref[...], preferred_element_type=jnp.float32)
    bc_scr[...] = jnp.dot(u_c, w_bc_ref[...], preferred_element_type=jnp.float32)

    # ---- dt projection + delta_bias + softplus -----------------------------
    dt_raw = jnp.dot(dt_lr.astype(cdt), w_dt_ref[...],
                     preferred_element_type=jnp.float32)
    dt_scr[...] = _softplus(dt_raw + b_dt_ref[...])

    A = a_ref[...]                                                  # (N, D_inner)

    # ---- selective scan: chunked recurrence, state carried across tiles ---
    n_chunks = tl // chunk

    def chunk_body(ci, h):
        t0 = pl.multiple_of(ci * chunk, chunk)
        dt_c = dt_scr[pl.ds(t0, chunk), :]                 # (chunk, D)
        u_cc = u_scr[pl.ds(t0, chunk), :]                  # (chunk, D)
        bc_c = bc_scr[pl.ds(t0, chunk), :]                 # (chunk, 2N)
        b_c = bc_c[:, :d_state]                            # (chunk, N)
        c_c = bc_c[:, d_state:]                            # (chunk, N)
        dtu_c = dt_c * u_cc
        # batched per-chunk exp + dBu (one long EUP / VALU stream)
        dA = jnp.exp(dt_c[:, None, :] * A[None, :, :])     # (chunk, N, D)
        dBu = dtu_c[:, None, :] * b_c[:, :, None]          # (chunk, N, D)
        rows = []
        for j in range(chunk):
            h = dA[j] * h + dBu[j]
            # y_t = C_t @ h_t : (1,N)@(N,D) on the MXU
            rows.append(jnp.dot(c_c[j:j + 1, :], h,
                                preferred_element_type=jnp.float32))
        # one unmasked (chunk, D_inner) store
        y_scr[pl.ds(t0, chunk), :] = jnp.concatenate(rows, axis=0)
        return h

    h = jax.lax.fori_loop(0, n_chunks, chunk_body, h_scr[...])
    h_scr[...] = h

    # ---- skip term, gate, output projection --------------------------------
    y = y_scr[...] + u * d_ref[...]
    y = y * _silu(z)
    o_ref[0] = jnp.dot(y.astype(cdt), w_out_ref[...],
                       preferred_element_type=jnp.float32)


# ---------------------------------------------------------------- wrapper ---
def mamba_block_pallas(x, params, *, d_inner, d_state, dt_rank, k,
                       seq_tile=128, compute_dtype=jnp.float32):
    Bsz, L, d_in = x.shape
    (W_in, W_conv, b_conv, W_sel, W_dt, b_dt, A_log, Dp, W_out) = params
    cdt = compute_dtype

    # host-side (free, one-time) layout prep: transpose / split / cast weights
    W_in_x_T = W_in[:d_inner, :].T.astype(cdt)             # (D_in, D_inner)
    W_in_z_T = W_in[d_inner:, :].T.astype(cdt)             # (D_in, D_inner)
    W_dtlr_T = W_sel[:dt_rank, :].T.astype(cdt)            # (D_inner, R)
    W_bc_T = W_sel[dt_rank:, :].T.astype(cdt)              # (D_inner, 2N)
    W_dt_T = W_dt.T.astype(cdt)                            # (R, D_inner)
    A_T = (-jnp.exp(A_log)).T.astype(jnp.float32)          # (N, D_inner)
    W_out_T = W_out.T.astype(cdt)                          # (D_inner, D_in)
    W_conv_f = W_conv.astype(jnp.float32)
    b_conv_f = b_conv.astype(jnp.float32)
    b_dt_f = b_dt.astype(jnp.float32)
    Dp_f = Dp.astype(jnp.float32)

    chunk = 8
    tl = max(chunk, (seq_tile // chunk) * chunk)
    L_pad = ((L + tl - 1) // tl) * tl
    if L_pad != L:
        x = jnp.pad(x, ((0, 0), (0, L_pad - L), (0, 0)))
    nt = L_pad // tl

    kernel = functools.partial(
        mamba_block_kernel,
        tl=tl, d_inner=d_inner, d_state=d_state, k=k, chunk=chunk,
        compute_dtype=cdt,
    )

    def w_spec(arr):
        nd = arr.ndim
        return pl.BlockSpec(arr.shape, lambda b, l, _nd=nd: (0,) * _nd)

    weights = (W_in_x_T, W_in_z_T, W_conv_f, b_conv_f, W_dtlr_T, W_bc_T,
               W_dt_T, b_dt_f, A_T, Dp_f, W_out_T)

    grid_spec = pltpu.PrefetchScalarGridSpec(
        num_scalar_prefetch=0,
        grid=(Bsz, nt),
        in_specs=[pl.BlockSpec((1, tl, d_in), lambda b, l: (b, l, 0))]
                 + [w_spec(w) for w in weights],
        out_specs=pl.BlockSpec((1, tl, d_in), lambda b, l: (b, l, 0)),
        scratch_shapes=[
            pltpu.VMEM((tl + k - 1, d_inner), jnp.float32),  # conv window
            pltpu.VMEM((d_state, d_inner), jnp.float32),     # carried h state
            pltpu.VMEM((tl, d_inner), jnp.float32),          # dt
            pltpu.VMEM((tl, d_inner), jnp.float32),          # u
            pltpu.VMEM((tl, 2 * d_state), jnp.float32),      # [B | C]
            pltpu.VMEM((tl, d_inner), jnp.float32),          # y
        ],
    )

    # hardware-aware scoped-VMEM budget (clamped to chip capacity - headroom)
    try:
        cap = int(getattr(pltpu.get_tpu_info(), "vmem_capacity_bytes",
                          64 * 2**20))
    except Exception:
        cap = 64 * 2**20
    weight_bytes = sum(int(w.size) * w.dtype.itemsize for w in weights)
    io_bytes = 2 * 2 * (tl * d_in * 4)                     # double-buffered x/out
    scratch_bytes = ((tl + k - 1) * d_inner + d_state * d_inner
                     + 3 * tl * d_inner + tl * 2 * d_state) * 4
    est = 2 * weight_bytes + io_bytes + scratch_bytes
    vmem_limit = int(min(int(0.8 * cap), max(32 * 2**20, 3 * est)))

    out = pl.pallas_call(
        kernel,
        out_shape=jax.ShapeDtypeStruct((Bsz, L_pad, d_in), jnp.float32),
        grid_spec=grid_spec,
        compiler_params=pltpu.CompilerParams(
            dimension_semantics=("parallel", "arbitrary"),
            vmem_limit_bytes=vmem_limit),
    )(x, *weights)

    return out[:, :L, :] if L_pad != L else out


# ----------------------------------------------------- pure-JAX reference ---
def mamba_block_ref(x, params, *, d_inner, d_state, dt_rank, k):
    (W_in, W_conv, b_conv, W_sel, W_dt, b_dt, A_log, Dp, W_out) = params
    Bsz, L, _ = x.shape

    xz = x @ W_in.T
    xs, z = xz[..., :d_inner], xz[..., d_inner:]

    pad = k - 1
    xp = jnp.pad(xs, ((0, 0), (pad, 0), (0, 0)))
    xc = jnp.broadcast_to(b_conv[None, :, :], (Bsz, L, d_inner)).astype(jnp.float32)
    for j in range(k):
        xc = xc + W_conv[j][None, None, :] * xp[:, j:j + L, :]
    u = xc * jax.nn.sigmoid(xc)

    dtbc = u @ W_sel.T
    dt_lr = dtbc[..., :dt_rank]
    Bm = dtbc[..., dt_rank:dt_rank + d_state]
    Cm = dtbc[..., dt_rank + d_state:]
    dt = _softplus(dt_lr @ W_dt.T + b_dt)

    A = -jnp.exp(A_log)

    def step(h, inp):
        dt_t, u_t, b_t, c_t = inp
        dA = jnp.exp(dt_t[:, :, None] * A[None])
        dBu = (dt_t * u_t)[:, :, None] * b_t[:, None, :]
        h = dA * h + dBu
        y_t = jnp.sum(h * c_t[:, None, :], axis=-1)
        return h, y_t

    h0 = jnp.zeros((Bsz, d_inner, d_state), jnp.float32)
    _, ys = jax.lax.scan(
        step, h0,
        (dt.transpose(1, 0, 2), u.transpose(1, 0, 2),
         Bm.transpose(1, 0, 2), Cm.transpose(1, 0, 2)),
    )
    y = ys.transpose(1, 0, 2)
    y = y + u * Dp[0][None, None, :]
    y = y * (z * jax.nn.sigmoid(z))
    return y @ W_out.T


# ------------------------------------------------------------------- main ---
def make_params(key, *, d_in, d_inner, d_state, dt_rank, k,
                dt_min=0.001, dt_max=0.1, dt_init_floor=1e-4):
    ks = jax.random.split(key, 8)

    def lin(kk, out_f, in_f):
        bound = 1.0 / math.sqrt(in_f)
        return jax.random.uniform(kk, (out_f, in_f), jnp.float32, -bound, bound)

    W_in = lin(ks[0], 2 * d_inner, d_in)                      # input_proj (no bias)
    conv_bound = 1.0 / math.sqrt(k)
    W_conv = jax.random.uniform(ks[1], (k, d_inner), jnp.float32,
                                -conv_bound, conv_bound)
    b_conv = jax.random.uniform(ks[2], (1, d_inner), jnp.float32,
                                -conv_bound, conv_bound)
    W_sel = lin(ks[3], dt_rank + 2 * d_state, d_inner)        # selective_proj (no bias)

    # dt_proj init (InitMambaParams.dt_init, dt_init='random')
    dt_std = dt_rank ** -0.5
    W_dt = jax.random.uniform(ks[4], (d_inner, dt_rank), jnp.float32, -dt_std, dt_std)
    dt = jnp.exp(
        jax.random.uniform(ks[5], (d_inner,), jnp.float32)
        * (math.log(dt_max) - math.log(dt_min)) + math.log(dt_min)
    )
    dt = jnp.maximum(dt, dt_init_floor)
    b_dt = (dt + jnp.log(-jnp.expm1(-dt)))[None, :]           # inverse softplus

    # A_log / D (InitMambaParams.a_log_init / d_init, copies=-1)
    A_log = jnp.log(
        jnp.broadcast_to(jnp.arange(1, d_state + 1, dtype=jnp.float32)[None, :],
                         (d_inner, d_state))
    )
    Dp = jnp.ones((1, d_inner), jnp.float32)

    W_out = lin(ks[6], d_in, d_inner)                          # output_proj (no bias)
    return (W_in, W_conv, b_conv, W_sel, W_dt, b_dt, A_log, Dp, W_out)


if __name__ == "__main__":
    # small config: input_dim=32, hidden_state=16, expand=2 -> inner=64,
    # dt_rank = ceil(32/16) = 2, conv kernel k=3, batch=2, seq len L=64
    d_in, d_state, expand, k = 32, 16, 2, 3
    d_inner = d_in * expand
    dt_rank = math.ceil(d_in / 16)
    Bsz, L = 2, 64

    key = jax.random.PRNGKey(0)
    kx, kp = jax.random.split(key)
    x = jax.random.normal(kx, (Bsz, L, d_in), jnp.float32)
    params = make_params(kp, d_in=d_in, d_inner=d_inner, d_state=d_state,
                         dt_rank=dt_rank, k=k)

    ref = jax.block_until_ready(
        mamba_block_ref(x, params, d_inner=d_inner, d_state=d_state,
                        dt_rank=dt_rank, k=k))

    # f32 MXU operands: strict check (math identical to the reference)
    out_f32 = jax.block_until_ready(
        mamba_block_pallas(x, params, d_inner=d_inner, d_state=d_state,
                           dt_rank=dt_rank, k=k, seq_tile=16,
                           compute_dtype=jnp.float32))
    np.testing.assert_allclose(np.asarray(out_f32), np.asarray(ref),
                               rtol=2e-4, atol=2e-4)

    # bf16 MXU operands (v6e/v7x fast path), f32 recurrence: loose check
    out_bf16 = jax.block_until_ready(
        mamba_block_pallas(x, params, d_inner=d_inner, d_state=d_state,
                           dt_rank=dt_rank, k=k, seq_tile=16,
                           compute_dtype=jnp.bfloat16))
    np.testing.assert_allclose(np.asarray(out_bf16), np.asarray(ref),
                               rtol=1e-1, atol=1e-1)

    print("KERNEL_OK")
</pallas_src>

<mosaic_0001>
module attributes {stable_mosaic.version = 11 : i64} {
  func.func @mamba_block_kernel(%arg0: i32, %arg1: i32, %arg2: memref<1x16x32xf32, #tpu.memory_space<vmem>>, %arg3: memref<32x64xf32, #tpu.memory_space<vmem>>, %arg4: memref<32x64xf32, #tpu.memory_space<vmem>>, %arg5: memref<3x64xf32, #tpu.memory_space<vmem>>, %arg6: memref<1x64xf32, #tpu.memory_space<vmem>>, %arg7: memref<64x2xf32, #tpu.memory_space<vmem>>, %arg8: memref<64x32xf32, #tpu.memory_space<vmem>>, %arg9: memref<2x64xf32, #tpu.memory_space<vmem>>, %arg10: memref<1x64xf32, #tpu.memory_space<vmem>>, %arg11: memref<16x64xf32, #tpu.memory_space<vmem>>, %arg12: memref<1x64xf32, #tpu.memory_space<vmem>>, %arg13: memref<64x32xf32, #tpu.memory_space<vmem>>, %arg14: memref<1x16x32xf32, #tpu.memory_space<vmem>>, %arg15: memref<18x64xf32, #tpu.memory_space<vmem>>, %arg16: memref<16x64xf32, #tpu.memory_space<vmem>>, %arg17: memref<16x64xf32, #tpu.memory_space<vmem>>, %arg18: memref<16x64xf32, #tpu.memory_space<vmem>>, %arg19: memref<16x32xf32, #tpu.memory_space<vmem>>, %arg20: memref<16x64xf32, #tpu.memory_space<vmem>>) attributes {dimension_semantics = [#tpu.dimension_semantics<parallel>, #tpu.dimension_semantics<arbitrary>], iteration_bounds = array<i64: 2, 4>, scalar_prefetch = 0 : i64, scratch_operands = 6 : i64, tpu.core_type = #tpu.core_type<tc>, window_params = [{transform_indices = @transform_0, window_bounds = array<i64: 1, 16, 32>}, {pipeline_mode = #tpu.pipeline_mode<synchronous>, transform_indices = @transform_1, window_bounds = array<i64: 32, 64>}, {pipeline_mode = #tpu.pipeline_mode<synchronous>, transform_indices = @transform_2, window_bounds = array<i64: 32, 64>}, {pipeline_mode = #tpu.pipeline_mode<synchronous>, transform_indices = @transform_3, window_bounds = array<i64: 3, 64>}, {pipeline_mode = #tpu.pipeline_mode<synchronous>, transform_indices = @transform_4, window_bounds = array<i64: 1, 64>}, {pipeline_mode = #tpu.pipeline_mode<synchronous>, transform_indices = @transform_5, window_bounds = array<i64: 64, 2>}, {pipeline_mode = #tpu.pipeline_mode<synchronous>, transform_indices = @transform_6, window_bounds = array<i64: 64, 32>}, {pipeline_mode = #tpu.pipeline_mode<synchronous>, transform_indices = @transform_7, window_bounds = array<i64: 2, 64>}, {pipeline_mode = #tpu.pipeline_mode<synchronous>, transform_indices = @transform_8, window_bounds = array<i64: 1, 64>}, {pipeline_mode = #tpu.pipeline_mode<synchronous>, transform_indices = @transform_9, window_bounds = array<i64: 16, 64>}, {pipeline_mode = #tpu.pipeline_mode<synchronous>, transform_indices = @transform_10, window_bounds = array<i64: 1, 64>}, {pipeline_mode = #tpu.pipeline_mode<synchronous>, transform_indices = @transform_11, window_bounds = array<i64: 64, 32>}, {transform_indices = @transform_12, window_bounds = array<i64: 1, 16, 32>}]} {
    %c0_i32 = arith.constant 0 : i32
    %0 = arith.cmpi eq, %arg1, %c0_i32 : i32
    %1 = arith.extui %0 : i1 to i32
    %c0_i32_0 = arith.constant 0 : i32
    %2 = arith.cmpi ne, %1, %c0_i32_0 : i32
    scf.if %2 {
      %cst_63 = arith.constant 0.000000e+00 : f32
      %75 = vector.broadcast %cst_63 : f32 to vector<16x64xf32>
      %c0_64 = arith.constant 0 : index
      %c0_65 = arith.constant 0 : index
      %76 = vector.load %arg16[%c0_64, %c0_65] : memref<16x64xf32, #tpu.memory_space<vmem>>, vector<16x64xf32>
      tpu.vector_store %arg16[%c0_64, %c0_65], %75 {strides = array<i32>} : memref<16x64xf32, #tpu.memory_space<vmem>>, vector<16x64xf32>,
      %cst_66 = arith.constant 0.000000e+00 : f32
      %77 = vector.broadcast %cst_66 : f32 to vector<2x64xf32>
      %c0_67 = arith.constant 0 : index
      %c0_68 = arith.constant 0 : index
      %78 = vector.load %arg15[%c0_67, %c0_68] : memref<18x64xf32, #tpu.memory_space<vmem>>, vector<2x64xf32>
      tpu.vector_store %arg15[%c0_67, %c0_68], %77 {strides = array<i32>} : memref<18x64xf32, #tpu.memory_space<vmem>>, vector<2x64xf32>,
    } else {
    }
    %c0 = arith.constant 0 : index
    %c0_1 = arith.constant 0 : index
    %c0_2 = arith.constant 0 : index
    %3 = vector.load %arg2[%c0, %c0_1, %c0_2] : memref<1x16x32xf32, #tpu.memory_space<vmem>>, vector<1x16x32xf32>
    %4 = vector.shape_cast %3 : vector<1x16x32xf32> to vector<16x32xf32>
    %c0_3 = arith.constant 0 : index
    %c0_4 = arith.constant 0 : index
    %5 = vector.load %arg3[%c0_3, %c0_4] : memref<32x64xf32, #tpu.memory_space<vmem>>, vector<32x64xf32>
    %cst = arith.constant dense<0.000000e+00> : vector<16x64xf32>
    %6 = tpu.matmul %4, %5, %cst {dimension_numbers = #tpu.dot_dimension_numbers<[1], [0], [0], [1], [0, 0, 1, 1], [], []>} : vector<16x32xf32>, vector<32x64xf32>, vector<16x64xf32> -> vector<16x64xf32>
    %c0_5 = arith.constant 0 : index
    %c0_6 = arith.constant 0 : index
    %7 = vector.load %arg4[%c0_5, %c0_6] : memref<32x64xf32, #tpu.memory_space<vmem>>, vector<32x64xf32>
    %cst_7 = arith.constant dense<0.000000e+00> : vector<16x64xf32>
    %8 = tpu.matmul %4, %7, %cst_7 {dimension_numbers = #tpu.dot_dimension_numbers<[1], [0], [0], [1], [0, 0, 1, 1], [], []>} : vector<16x32xf32>, vector<32x64xf32>, vector<16x64xf32> -> vector<16x64xf32>
    %c2 = arith.constant 2 : index
    %c0_8 = arith.constant 0 : index
    %9 = vector.load %arg15[%c2, %c0_8] : memref<18x64xf32, #tpu.memory_space<vmem>>, vector<16x64xf32>
    tpu.vector_store %arg15[%c2, %c0_8], %6 {strides = array<i32>} : memref<18x64xf32, #tpu.memory_space<vmem>>, vector<16x64xf32>,
    %c0_9 = arith.constant 0 : index
    %c0_10 = arith.constant 0 : index
    %10 = vector.load %arg6[%c0_9, %c0_10] : memref<1x64xf32, #tpu.memory_space<vmem>>, vector<1x64xf32>
    %11 = vector.shape_cast %10 : vector<1x64xf32> to vector<1x64xf32>
    %12 = vector.broadcast %11 : vector<1x64xf32> to vector<16x64xf32>
    %c0_11 = arith.constant 0 : index
    %c0_12 = arith.constant 0 : index
    %13 = vector.load %arg5[%c0_11, %c0_12] : memref<3x64xf32, #tpu.memory_space<vmem>>, vector<1x64xf32>
    %c0_13 = arith.constant 0 : index
    %c0_14 = arith.constant 0 : index
    %14 = vector.load %arg15[%c0_13, %c0_14] : memref<18x64xf32, #tpu.memory_space<vmem>>, vector<16x64xf32>
    %15 = vector.broadcast %13 : vector<1x64xf32> to vector<16x64xf32>
    %16 = arith.mulf %15, %14 : vector<16x64xf32>
    %17 = arith.addf %12, %16 : vector<16x64xf32>
    %c1 = arith.constant 1 : index
    %c0_15 = arith.constant 0 : index
    %18 = vector.load %arg5[%c1, %c0_15] : memref<3x64xf32, #tpu.memory_space<vmem>>, vector<1x64xf32>
    %c1_16 = arith.constant 1 : index
    %c0_17 = arith.constant 0 : index
    %19 = vector.load %arg15[%c1_16, %c0_17] : memref<18x64xf32, #tpu.memory_space<vmem>>, vector<16x64xf32>
    %20 = vector.broadcast %18 : vector<1x64xf32> to vector<16x64xf32>
    %21 = arith.mulf %20, %19 : vector<16x64xf32>
    %22 = arith.addf %17, %21 : vector<16x64xf32>
    %c2_18 = arith.constant 2 : index
    %c0_19 = arith.constant 0 : index
    %23 = vector.load %arg5[%c2_18, %c0_19] : memref<3x64xf32, #tpu.memory_space<vmem>>, vector<1x64xf32>
    %c2_20 = arith.constant 2 : index
    %c0_21 = arith.constant 0 : index
    %24 = vector.load %arg15[%c2_20, %c0_21] : memref<18x64xf32, #tpu.memory_space<vmem>>, vector<16x64xf32>
    %25 = vector.broadcast %23 : vector<1x64xf32> to vector<16x64xf32>
    %26 = arith.mulf %25, %24 : vector<16x64xf32>
    %27 = arith.addf %22, %26 : vector<16x64xf32>
    %c16 = arith.constant 16 : index
    %c0_22 = arith.constant 0 : index
    %28 = vector.load %arg15[%c16, %c0_22] : memref<18x64xf32, #tpu.memory_space<vmem>>, vector<2x64xf32>
    %c0_23 = arith.constant 0 : index
    %c0_24 = arith.constant 0 : index
    %29 = vector.load %arg15[%c0_23, %c0_24] : memref<18x64xf32, #tpu.memory_space<vmem>>, vector<2x64xf32>
    tpu.vector_store %arg15[%c0_23, %c0_24], %28 {strides = array<i32>} : memref<18x64xf32, #tpu.memory_space<vmem>>, vector<2x64xf32>,
    %30 = arith.negf %27 : vector<16x64xf32>
    %31 = math.exp %30 : vector<16x64xf32>
    %cst_25 = arith.constant 1.000000e+00 : f32
    %32 = vector.broadcast %cst_25 : f32 to vector<16x64xf32>
    %33 = arith.addf %32, %31 : vector<16x64xf32>
    %34 = arith.divf %32, %33 : vector<16x64xf32>
    %35 = arith.mulf %27, %34 : vector<16x64xf32>
    %c0_26 = arith.constant 0 : index
    %c0_27 = arith.constant 0 : index
    %36 = vector.load %arg18[%c0_26, %c0_27] : memref<16x64xf32, #tpu.memory_space<vmem>>, vector<16x64xf32>
    tpu.vector_store %arg18[%c0_26, %c0_27], %35 {strides = array<i32>} : memref<16x64xf32, #tpu.memory_space<vmem>>, vector<16x64xf32>,
    %c0_28 = arith.constant 0 : index
    %c0_29 = arith.constant 0 : index
    %37 = vector.load %arg7[%c0_28, %c0_29] : memref<64x2xf32, #tpu.memory_space<vmem>>, vector<64x2xf32>
    %cst_30 = arith.constant dense<0.000000e+00> : vector<16x2xf32>
    %38 = tpu.matmul %35, %37, %cst_30 {dimension_numbers = #tpu.dot_dimension_numbers<[1], [0], [0], [1], [0, 0, 1, 1], [], []>} : vector<16x64xf32>, vector<64x2xf32>, vector<16x2xf32> -> vector<16x2xf32>
    %c0_31 = arith.constant 0 : index
    %c0_32 = arith.constant 0 : index
    %39 = vector.load %arg8[%c0_31, %c0_32] : memref<64x32xf32, #tpu.memory_space<vmem>>, vector<64x32xf32>
    %cst_33 = arith.constant dense<0.000000e+00> : vector<16x32xf32>
    %40 = tpu.matmul %35, %39, %cst_33 {dimension_numbers = #tpu.dot_dimension_numbers<[1], [0], [0], [1], [0, 0, 1, 1], [], []>} : vector<16x64xf32>, vector<64x32xf32>, vector<16x32xf32> -> vector<16x32xf32>
    %c0_34 = arith.constant 0 : index
    %c0_35 = arith.constant 0 : index
    %41 = vector.load %arg19[%c0_34, %c0_35] : memref<16x32xf32, #tpu.memory_space<vmem>>, vector<16x32xf32>
    tpu.vector_store %arg19[%c0_34, %c0_35], %40 {strides = array<i32>} : memref<16x32xf32, #tpu.memory_space<vmem>>, vector<16x32xf32>,
    %c0_36 = arith.constant 0 : index
    %c0_37 = arith.constant 0 : index
    %42 = vector.load %arg9[%c0_36, %c0_37] : memref<2x64xf32, #tpu.memory_space<vmem>>, vector<2x64xf32>
    %cst_38 = arith.constant dense<0.000000e+00> : vector<16x64xf32>
    %43 = tpu.matmul %38, %42, %cst_38 {dimension_numbers = #tpu.dot_dimension_numbers<[1], [0], [0], [1], [0, 0, 1, 1], [], []>} : vector<16x2xf32>, vector<2x64xf32>, vector<16x64xf32> -> vector<16x64xf32>
    %c0_39 = arith.constant 0 : index
    %c0_40 = arith.constant 0 : index
    %44 = vector.load %arg10[%c0_39, %c0_40] : memref<1x64xf32, #tpu.memory_space<vmem>>, vector<1x64xf32>
    %45 = vector.broadcast %44 : vector<1x64xf32> to vector<16x64xf32>
    %46 = arith.addf %43, %45 : vector<16x64xf32>
    %cst_41 = arith.constant 2.000000e+01 : f32
    %47 = vector.broadcast %cst_41 : f32 to vector<16x64xf32>
    %48 = arith.cmpf ogt, %46, %47 : vector<16x64xf32>
    %49 = math.exp %46 : vector<16x64xf32>
    %50 = math.log1p %49 : vector<16x64xf32>
    %51 = arith.select %48, %46, %50 : vector<16x64xi1>, vector<16x64xf32>
    %c0_42 = arith.constant 0 : index
    %c0_43 = arith.constant 0 : index
    %52 = vector.load %arg17[%c0_42, %c0_43] : memref<16x64xf32, #tpu.memory_space<vmem>>, vector<16x64xf32>
    tpu.vector_store %arg17[%c0_42, %c0_43], %51 {strides = array<i32>} : memref<16x64xf32, #tpu.memory_space<vmem>>, vector<16x64xf32>,
    %c0_44 = arith.constant 0 : index
    %c0_45 = arith.constant 0 : index
    %53 = vector.load %arg11[%c0_44, %c0_45] : memref<16x64xf32, #tpu.memory_space<vmem>>, vector<16x64xf32>
    %c0_46 = arith.constant 0 : index
    %c0_47 = arith.constant 0 : index
    %54 = vector.load %arg16[%c0_46, %c0_47] : memref<16x64xf32, #tpu.memory_space<vmem>>, vector<16x64xf32>
    %c0_i32_48 = arith.constant 0 : i32
    %c2_i32 = arith.constant 2 : i32
    %55 = arith.addi %c0_i32_48, %c2_i32 : i32
    %c1_i32 = arith.constant 1 : i32
    %56 = scf.for %arg21 = %c0_i32_48 to %55 step %c1_i32 iter_args(%arg22 = %54) -> (vector<16x64xf32>)  : i32 {
      %c8_i32 = arith.constant 8 : i32
      %75 = arith.muli %arg21, %c8_i32 : i32
      %76 = tpu.assume_multiple %75, 8 : i32
      %77 = arith.index_cast %76 : i32 to index
      %c0_63 = arith.constant 0 : index
      %78 = vector.load %arg17[%77, %c0_63] : memref<16x64xf32, #tpu.memory_space<vmem>>, vector<8x64xf32>
      %79 = arith.index_cast %76 : i32 to index
      %c0_64 = arith.constant 0 : index
      %80 = vector.load %arg18[%79, %c0_64] : memref<16x64xf32, #tpu.memory_space<vmem>>, vector<8x64xf32>
      %81 = arith.index_cast %76 : i32 to index
      %c0_65 = arith.constant 0 : index
      %82 = vector.load %arg19[%81, %c0_65] : memref<16x32xf32, #tpu.memory_space<vmem>>, vector<8x32xf32>
      %83 = vector.extract_strided_slice %82 {offsets = [0, 0], sizes = [8, 16], strides = [1, 1]} : vector<8x32xf32> to vector<8x16xf32>
      %84 = vector.extract_strided_slice %82 {offsets = [0, 16], sizes = [8, 16], strides = [1, 1]} : vector<8x32xf32> to vector<8x16xf32>
      %85 = arith.mulf %78, %80 : vector<8x64xf32>
      %86 = vector.shape_cast %78 : vector<8x64xf32> to vector<8x1x64xf32>
      %87 = vector.shape_cast %53 : vector<16x64xf32> to vector<1x16x64xf32>
      %88 = vector.broadcast %86 : vector<8x1x64xf32> to vector<8x16x64xf32>
      %89 = vector.broadcast %87 : vector<1x16x64xf32> to vector<8x16x64xf32>
      %90 = arith.mulf %88, %89 : vector<8x16x64xf32>
      %91 = math.exp %90 : vector<8x16x64xf32>
      %92 = vector.shape_cast %85 : vector<8x64xf32> to vector<8x1x64xf32>
      %93 = vector.shape_cast %83 : vector<8x16xf32> to vector<8x16x1xf32>
      %94 = vector.broadcast %92 : vector<8x1x64xf32> to vector<8x16x64xf32>
      %95 = vector.broadcast %93 : vector<8x16x1xf32> to vector<8x16x64xf32>
      %96 = arith.mulf %94, %95 : vector<8x16x64xf32>
      %97 = vector.extract_strided_slice %91 {offsets = [0, 0, 0], sizes = [1, 16, 64], strides = [1, 1, 1]} : vector<8x16x64xf32> to vector<1x16x64xf32>
      %98 = vector.shape_cast %97 : vector<1x16x64xf32> to vector<16x64xf32>
      %99 = arith.mulf %98, %arg22 : vector<16x64xf32>
      %100 = vector.extract_strided_slice %96 {offsets = [0, 0, 0], sizes = [1, 16, 64], strides = [1, 1, 1]} : vector<8x16x64xf32> to vector<1x16x64xf32>
      %101 = vector.shape_cast %100 : vector<1x16x64xf32> to vector<16x64xf32>
      %102 = arith.addf %99, %101 : vector<16x64xf32>
      %103 = vector.extract_strided_slice %84 {offsets = [0, 0], sizes = [1, 16], strides = [1, 1]} : vector<8x16xf32> to vector<1x16xf32>
      %cst_66 = arith.constant dense<0.000000e+00> : vector<1x64xf32>
      %104 = tpu.matmul %103, %102, %cst_66 {dimension_numbers = #tpu.dot_dimension_numbers<[1], [0], [0], [1], [0, 0, 1, 1], [], []>} : vector<1x16xf32>, vector<16x64xf32>, vector<1x64xf32> -> vector<1x64xf32>
      %105 = vector.extract_strided_slice %91 {offsets = [1, 0, 0], sizes = [1, 16, 64], strides = [1, 1, 1]} : vector<8x16x64xf32> to vector<1x16x64xf32>
      %106 = vector.shape_cast %105 : vector<1x16x64xf32> to vector<16x64xf32>
      %107 = arith.mulf %106, %102 : vector<16x64xf32>
      %108 = vector.extract_strided_slice %96 {offsets = [1, 0, 0], sizes = [1, 16, 64], strides = [1, 1, 1]} : vector<8x16x64xf32> to vector<1x16x64xf32>
      %109 = vector.shape_cast %108 : vector<1x16x64xf32> to vector<16x64xf32>
      %110 = arith.addf %107, %109 : vector<16x64xf32>
      %111 = vector.extract_strided_slice %84 {offsets = [1, 0], sizes = [1, 16], strides = [1, 1]} : vector<8x16xf32> to vector<1x16xf32>
      %cst_67 = arith.constant dense<0.000000e+00> : vector<1x64xf32>
      %112 = tpu.matmul %111, %110, %cst_67 {dimension_numbers = #tpu.dot_dimension_numbers<[1], [0], [0], [1], [0, 0, 1, 1], [], []>} : vector<1x16xf32>, vector<16x64xf32>, vector<1x64xf32> -> vector<1x64xf32>
      %113 = vector.extract_strided_slice %91 {offsets = [2, 0, 0], sizes = [1, 16, 64], strides = [1, 1, 1]} : vector<8x16x64xf32> to vector<1x16x64xf32>
      %114 = vector.shape_cast %113 : vector<1x16x64xf32> to vector<16x64xf32>
      %115 = arith.mulf %114, %110 : vector<16x64xf32>
      %116 = vector.extract_strided_slice %96 {offsets = [2, 0, 0], sizes = [1, 16, 64], strides = [1, 1, 1]} : vector<8x16x64xf32> to vector<1x16x64xf32>
      %117 = vector.shape_cast %116 : vector<1x16x64xf32> to vector<16x64xf32>
      %118 = arith.addf %115, %117 : vector<16x64xf32>
      %119 = vector.extract_strided_slice %84 {offsets = [2, 0], sizes = [1, 16], strides = [1, 1]} : vector<8x16xf32> to vector<1x16xf32>
      %cst_68 = arith.constant dense<0.000000e+00> : vector<1x64xf32>
      %120 = tpu.matmul %119, %118, %cst_68 {dimension_numbers = #tpu.dot_dimension_numbers<[1], [0], [0], [1], [0, 0, 1, 1], [], []>} : vector<1x16xf32>, vector<16x64xf32>, vector<1x64xf32> -> vector<1x64xf32>
      %121 = vector.extract_strided_slice %91 {offsets = [3, 0, 0], sizes = [1, 16, 64], strides = [1, 1, 1]} : vector<8x16x64xf32> to vector<1x16x64xf32>
      %122 = vector.shape_cast %121 : vector<1x16x64xf32> to vector<16x64xf32>
      %123 = arith.mulf %122, %118 : vector<16x64xf32>
      %124 = vector.extract_strided_slice %96 {offsets = [3, 0, 0], sizes = [1, 16, 64], strides = [1, 1, 1]} : vector<8x16x64xf32> to vector<1x16x64xf32>
      %125 = vector.shape_cast %124 : vector<1x16x64xf32> to vector<16x64xf32>
      %126 = arith.addf %123, %125 : vector<16x64xf32>
      %127 = vector.extract_strided_slice %84 {offsets = [3, 0], sizes = [1, 16], strides = [1, 1]} : vector<8x16xf32> to vector<1x16xf32>
      %cst_69 = arith.constant dense<0.000000e+00> : vector<1x64xf32>
      %128 = tpu.matmul %127, %126, %cst_69 {dimension_numbers = #tpu.dot_dimension_numbers<[1], [0], [0], [1], [0, 0, 1, 1], [], []>} : vector<1x16xf32>, vector<16x64xf32>, vector<1x64xf32> -> vector<1x64xf32>
      %129 = vector.extract_strided_slice %91 {offsets = [4, 0, 0], sizes = [1, 16, 64], strides = [1, 1, 1]} : vector<8x16x64xf32> to vector<1x16x64xf32>
      %130 = vector.shape_cast %129 : vector<1x16x64xf32> to vector<16x64xf32>
      %131 = arith.mulf %130, %126 : vector<16x64xf32>
      %132 = vector.extract_strided_slice %96 {offsets = [4, 0, 0], sizes = [1, 16, 64], strides = [1, 1, 1]} : vector<8x16x64xf32> to vector<1x16x64xf32>
      %133 = vector.shape_cast %132 : vector<1x16x64xf32> to vector<16x64xf32>
      %134 = arith.addf %131, %133 : vector<16x64xf32>
      %135 = vector.extract_strided_slice %84 {offsets = [4, 0], sizes = [1, 16], strides = [1, 1]} : vector<8x16xf32> to vector<1x16xf32>
      %cst_70 = arith.constant dense<0.000000e+00> : vector<1x64xf32>
      %136 = tpu.matmul %135, %134, %cst_70 {dimension_numbers = #tpu.dot_dimension_numbers<[1], [0], [0], [1], [0, 0, 1, 1], [], []>} : vector<1x16xf32>, vector<16x64xf32>, vector<1x64xf32> -> vector<1x64xf32>
      %137 = vector.extract_strided_slice %91 {offsets = [5, 0, 0], sizes = [1, 16, 64], strides = [1, 1, 1]} : vector<8x16x64xf32> to vector<1x16x64xf32>
      %138 = vector.shape_cast %137 : vector<1x16x64xf32> to vector<16x64xf32>
      %139 = arith.mulf %138, %134 : vector<16x64xf32>
      %140 = vector.extract_strided_slice %96 {offsets = [5, 0, 0], sizes = [1, 16, 64], strides = [1, 1, 1]} : vector<8x16x64xf32> to vector<1x16x64xf32>
      %141 = vector.shape_cast %140 : vector<1x16x64xf32> to vector<16x64xf32>
      %142 = arith.addf %139, %141 : vector<16x64xf32>
      %143 = vector.extract_strided_slice %84 {offsets = [5, 0], sizes = [1, 16], strides = [1, 1]} : vector<8x16xf32> to vector<1x16xf32>
      %cst_71 = arith.constant dense<0.000000e+00> : vector<1x64xf32>
      %144 = tpu.matmul %143, %142, %cst_71 {dimension_numbers = #tpu.dot_dimension_numbers<[1], [0], [0], [1], [0, 0, 1, 1], [], []>} : vector<1x16xf32>, vector<16x64xf32>, vector<1x64xf32> -> vector<1x64xf32>
      %145 = vector.extract_strided_slice %91 {offsets = [6, 0, 0], sizes = [1, 16, 64], strides = [1, 1, 1]} : vector<8x16x64xf32> to vector<1x16x64xf32>
      %146 = vector.shape_cast %145 : vector<1x16x64xf32> to vector<16x64xf32>
      %147 = arith.mulf %146, %142 : vector<16x64xf32>
      %148 = vector.extract_strided_slice %96 {offsets = [6, 0, 0], sizes = [1, 16, 64], strides = [1, 1, 1]} : vector<8x16x64xf32> to vector<1x16x64xf32>
      %149 = vector.shape_cast %148 : vector<1x16x64xf32> to vector<16x64xf32>
      %150 = arith.addf %147, %149 : vector<16x64xf32>
      %151 = vector.extract_strided_slice %84 {offsets = [6, 0], sizes = [1, 16], strides = [1, 1]} : vector<8x16xf32> to vector<1x16xf32>
      %cst_72 = arith.constant dense<0.000000e+00> : vector<1x64xf32>
      %152 = tpu.matmul %151, %150, %cst_72 {dimension_numbers = #tpu.dot_dimension_numbers<[1], [0], [0], [1], [0, 0, 1, 1], [], []>} : vector<1x16xf32>, vector<16x64xf32>, vector<1x64xf32> -> vector<1x64xf32>
      %153 = vector.extract_strided_slice %91 {offsets = [7, 0, 0], sizes = [1, 16, 64], strides = [1, 1, 1]} : vector<8x16x64xf32> to vector<1x16x64xf32>
      %154 = vector.shape_cast %153 : vector<1x16x64xf32> to vector<16x64xf32>
      %155 = arith.mulf %154, %150 : vector<16x64xf32>
      %156 = vector.extract_strided_slice %96 {offsets = [7, 0, 0], sizes = [1, 16, 64], strides = [1, 1, 1]} : vector<8x16x64xf32> to vector<1x16x64xf32>
      %157 = vector.shape_cast %156 : vector<1x16x64xf32> to vector<16x64xf32>
      %158 = arith.addf %155, %157 : vector<16x64xf32>
      %159 = vector.extract_strided_slice %84 {offsets = [7, 0], sizes = [1, 16], strides = [1, 1]} : vector<8x16xf32> to vector<1x16xf32>
      %cst_73 = arith.constant dense<0.000000e+00> : vector<1x64xf32>
      %160 = tpu.matmul %159, %158, %cst_73 {dimension_numbers = #tpu.dot_dimension_numbers<[1], [0], [0], [1], [0, 0, 1, 1], [], []>} : vector<1x16xf32>, vector<16x64xf32>, vector<1x64xf32> -> vector<1x64xf32>
      %161 = tpu.concatenate %104, %112, %120, %128, %136, %144, %152, %160 in 0 : vector<1x64xf32>, vector<1x64xf32>, vector<1x64xf32>, vector<1x64xf32>, vector<1x64xf32>, vector<1x64xf32>, vector<1x64xf32>, vector<1x64xf32> -> vector<8x64xf32>
      %162 = arith.index_cast %76 : i32 to index
      %c0_74 = arith.constant 0 : index
      %163 = vector.load %arg20[%162, %c0_74] : memref<16x64xf32, #tpu.memory_space<vmem>>, vector<8x64xf32>
      tpu.vector_store %arg20[%162, %c0_74], %161 {strides = array<i32>} : memref<16x64xf32, #tpu.memory_space<vmem>>, vector<8x64xf32>,
      scf.yield %158 : vector<16x64xf32>
    }
    %c2_i32_49 = arith.constant 2 : i32
    %c0_50 = arith.constant 0 : index
    %c0_51 = arith.constant 0 : index
    %57 = vector.load %arg16[%c0_50, %c0_51] : memref<16x64xf32, #tpu.memory_space<vmem>>, vector<16x64xf32>
    tpu.vector_store %arg16[%c0_50, %c0_51], %56 {strides = array<i32>} : memref<16x64xf32, #tpu.memory_space<vmem>>, vector<16x64xf32>,
    %c0_52 = arith.constant 0 : index
    %c0_53 = arith.constant 0 : index
    %58 = vector.load %arg20[%c0_52, %c0_53] : memref<16x64xf32, #tpu.memory_space<vmem>>, vector<16x64xf32>
    %c0_54 = arith.constant 0 : index
    %c0_55 = arith.constant 0 : index
    %59 = vector.load %arg12[%c0_54, %c0_55] : memref<1x64xf32, #tpu.memory_space<vmem>>, vector<1x64xf32>
    %60 = vector.broadcast %59 : vector<1x64xf32> to vector<16x64xf32>
    %61 = arith.mulf %35, %60 : vector<16x64xf32>
    %62 = arith.addf %58, %61 : vector<16x64xf32>
    %63 = arith.negf %8 : vector<16x64xf32>
    %64 = math.exp %63 : vector<16x64xf32>
    %cst_56 = arith.constant 1.000000e+00 : f32
    %65 = vector.broadcast %cst_56 : f32 to vector<16x64xf32>
    %66 = arith.addf %65, %64 : vector<16x64xf32>
    %67 = arith.divf %65, %66 : vector<16x64xf32>
    %68 = arith.mulf %8, %67 : vector<16x64xf32>
    %69 = arith.mulf %62, %68 : vector<16x64xf32>
    %c0_57 = arith.constant 0 : index
    %c0_58 = arith.constant 0 : index
    %70 = vector.load %arg13[%c0_57, %c0_58] : memref<64x32xf32, #tpu.memory_space<vmem>>, vector<64x32xf32>
    %cst_59 = arith.constant dense<0.000000e+00> : vector<16x32xf32>
    %71 = tpu.matmul %69, %70, %cst_59 {dimension_numbers = #tpu.dot_dimension_numbers<[1], [0], [0], [1], [0, 0, 1, 1], [], []>} : vector<16x64xf32>, vector<64x32xf32>, vector<16x32xf32> -> vector<16x32xf32>
    %c0_60 = arith.constant 0 : index
    %c0_61 = arith.constant 0 : index
    %c0_62 = arith.constant 0 : index
    %72 = vector.load %arg14[%c0_60, %c0_61, %c0_62] : memref<1x16x32xf32, #tpu.memory_space<vmem>>, vector<1x16x32xf32>
    %73 = vector.shape_cast %72 : vector<1x16x32xf32> to vector<16x32xf32>
    %74 = vector.shape_cast %71 : vector<16x32xf32> to vector<1x16x32xf32>
    tpu.vector_store %arg14[%c0_60, %c0_61, %c0_62], %74 {strides = array<i32>} : memref<1x16x32xf32, #tpu.memory_space<vmem>>, vector<1x16x32xf32>,
    return
  }
  func.func @transform_0(%arg0: i32, %arg1: i32) -> (i32, i32, i32) {
    %c0_i32 = arith.constant 0 : i32
    %c0_i32_0 = arith.constant 0 : i32
    return %arg0, %arg1, %c0_i32 : i32, i32, i32
  }
  func.func @transform_1(%arg0: i32, %arg1: i32) -> (i32, i32) {
    %c0_i32 = arith.constant 0 : i32
    %c0_i32_0 = arith.constant 0 : i32
    %c0_i32_1 = arith.constant 0 : i32
    return %c0_i32, %c0_i32_0 : i32, i32
  }
  func.func @transform_2(%arg0: i32, %arg1: i32) -> (i32, i32) {
    %c0_i32 = arith.constant 0 : i32
    %c0_i32_0 = arith.constant 0 : i32
    %c0_i32_1 = arith.constant 0 : i32
    return %c0_i32, %c0_i32_0 : i32, i32
  }
  func.func @transform_3(%arg0: i32, %arg1: i32) -> (i32, i32) {
    %c0_i32 = arith.constant 0 : i32
    %c0_i32_0 = arith.constant 0 : i32
    %c0_i32_1 = arith.constant 0 : i32
    return %c0_i32, %c0_i32_0 : i32, i32
  }
  func.func @transform_4(%arg0: i32, %arg1: i32) -> (i32, i32) {
    %c0_i32 = arith.constant 0 : i32
    %c0_i32_0 = arith.constant 0 : i32
    %c0_i32_1 = arith.constant 0 : i32
    return %c0_i32, %c0_i32_0 : i32, i32
  }
  func.func @transform_5(%arg0: i32, %arg1: i32) -> (i32, i32) {
    %c0_i32 = arith.constant 0 : i32
    %c0_i32_0 = arith.constant 0 : i32
    %c0_i32_1 = arith.constant 0 : i32
    return %c0_i32, %c0_i32_0 : i32, i32
  }
  func.func @transform_6(%arg0: i32, %arg1: i32) -> (i32, i32) {
    %c0_i32 = arith.constant 0 : i32
    %c0_i32_0 = arith.constant 0 : i32
    %c0_i32_1 = arith.constant 0 : i32
    return %c0_i32, %c0_i32_0 : i32, i32
  }
  func.func @transform_7(%arg0: i32, %arg1: i32) -> (i32, i32) {
    %c0_i32 = arith.constant 0 : i32
    %c0_i32_0 = arith.constant 0 : i32
    %c0_i32_1 = arith.constant 0 : i32
    return %c0_i32, %c0_i32_0 : i32, i32
  }
  func.func @transform_8(%arg0: i32, %arg1: i32) -> (i32, i32) {
    %c0_i32 = arith.constant 0 : i32
    %c0_i32_0 = arith.constant 0 : i32
    %c0_i32_1 = arith.constant 0 : i32
    return %c0_i32, %c0_i32_0 : i32, i32
  }
  func.func @transform_9(%arg0: i32, %arg1: i32) -> (i32, i32) {
    %c0_i32 = arith.constant 0 : i32
    %c0_i32_0 = arith.constant 0 : i32
    %c0_i32_1 = arith.constant 0 : i32
    return %c0_i32, %c0_i32_0 : i32, i32
  }
  func.func @transform_10(%arg0: i32, %arg1: i32) -> (i32, i32) {
    %c0_i32 = arith.constant 0 : i32
    %c0_i32_0 = arith.constant 0 : i32
    %c0_i32_1 = arith.constant 0 : i32
    return %c0_i32, %c0_i32_0 : i32, i32
  }
  func.func @transform_11(%arg0: i32, %arg1: i32) -> (i32, i32) {
    %c0_i32 = arith.constant 0 : i32
    %c0_i32_0 = arith.constant 0 : i32
    %c0_i32_1 = arith.constant 0 : i32
    return %c0_i32, %c0_i32_0 : i32, i32
  }
  func.func @transform_12(%arg0: i32, %arg1: i32) -> (i32, i32, i32) {
    %c0_i32 = arith.constant 0 : i32
    %c0_i32_0 = arith.constant 0 : i32
    return %arg0, %arg1, %c0_i32 : i32, i32, i32
  }
}

</mosaic_0001>

<bundles_post_ra>
// kernel: tpu_custom_call.1
= control target key start
LH: loop header
LB: loop body
LE: loop exit
PB: predicated region body
PF: predicated region fallthrough
CT: control target
= control target key end

     0   :  { %s2754_s21 = smov 0   ;;  %s2756_s22 = smov 0   ;;  %s3181_s0 = inlined_call_operand.vmem [shape: f32[2,64,32], index: 0, kind: input, shape index: {}]   ;;  %s3182_s1 = inlined_call_operand.vmem [shape: f32[32,64], index: 1, kind: input, shape index: {}]   ;;  %s3183_s2 = inlined_call_operand.vmem [shape: f32[32,64], index: 2, kind: input, shape index: {}]   ;;  %s3184_s3 = inlined_call_operand.vmem [shape: f32[3,64], index: 3, kind: input, shape index: {}]   ;;  %s3185_s4 = inlined_call_operand.vmem [shape: f32[1,64], index: 4, kind: input, shape index: {}]   ;;  %s3186_s5 = inlined_call_operand.vmem [shape: f32[64,2], index: 5, kind: input, shape index: {}]   ;;  %s3187_s6 = inlined_call_operand.vmem [shape: f32[64,32], index: 6, kind: input, shape index: {}]   ;;  %s3188_s7 = inlined_call_operand.vmem [shape: f32[2,64], index: 7, kind: input, shape index: {}]   ;;  %s3189_s8 = inlined_call_operand.vmem [shape: f32[1,64], index: 8, kind: input, shape index: {}]   ;;  %s3190_s9 = inlined_call_operand.vmem [shape: f32[16,64], index: 9, kind: input, shape index: {}]   ;;  %s3191_s10 = inlined_call_operand.vmem [shape: f32[1,64], index: 10, kind: input, shape index: {}]   ;;  %s3192_s11 = inlined_call_operand.vmem [shape: f32[64,32], index: 11, kind: input, shape index: {}]   ;;  %s3193_s12 = inlined_call_operand.vmem [shape: f32[2,64,32], index: 12, kind: output, shape index: {}]  }
   0x1   :  { %s2758_s23 = smov 0   ;;  %s2760_s24 = smov 0  }
   0x2   :  { %s2762_s25 = smov 0  }
   0x3 LB: > { %s31_s26 = sadd.s32 1, %s2662_s23  ;;  %s34_s27 = sadd.s32 1, %s2666_s24  ;;  %s2670_s25 = sphi %s2762_s25, %s22_s25   ;;  %s2666_s24 = sphi %s2760_s24, %s3199_s24   ;;  %s2662_s23 = sphi %s2758_s23, %s3198_s23   ;;  %s2658_s22 = sphi %s2756_s22, %s3197_s22   ;;  %s2654_s21 = sphi %s2754_s21, %s3196_s21  }
   0x4   : > { %p32_p0 = scmp.ge.s32.totalorder %s31_s26, 4  ;;  %p2243_p1 = scmp.ge.s32.totalorder %s2670_s25, 1 }
   0x5   : > { %p383_p2 = scmp.lt.s32.totalorder %s2670_s25, 9 }
   0x6   : > { %s3201_s26 = smov (%p32_p0, %s31_s26), 0  ;;  %s3203_s27 = smov (!%p32_p0, %s34_s27), %s2666_s24 }
   0x7   : > { %p384_p3 = pnand %p2243_p1, %p383_p2  ;;  %p36_p4 = scmp.ge.s32.totalorder %s3203_s27, 2 }
   0x8   : > { %s2244_s28 = sshll.u32 (!%p384_p3), %s2654_s21, 1  ;;  %p434_p5 = scmp.lt.s32.totalorder (!%p384_p3), %s2658_s22, 1 }
   0x9   : > { %s3205_s27 = smov (%p36_p4, %s3203_s27), 0  ;;  %387 = sbr.rel (%p384_p3) target bundleno = 1282 (0x502), region = 68 }
   0xa   : > { %p436_p6 = scmp.lt.s32.totalorder (!%p384_p3), %s2244_s28, 7  ;;  %p2250_p7 = scmp.ne.s32.totalorder (!%p384_p3), %s2654_s21, 0 }
   0xe   : > { %s3207_s22 = smov (!%p434_p5, %s2658_s22), 1  ;;  %s3209_s28 = smov (!%p436_p6, %s2244_s28), 7 }
   0xf   : > { %s2245_s29 = sshll.u32 %s3207_s22, 3  ;;  %456 = sbr.rel (%p2250_p7) target bundleno = 23 (0x17), region = 72 }
  0x10   : > { %s439_s30 = sadd.s32 %s2245_s29, %s3209_s28 }
  0x11   : > { %s2246_s13 = sshll.u32 %s439_s30, 3 }
  0x12   : > { %s441_s16 = scalar_lea.vmem %s3181_s0, %s2246_s13  ;;  %s2790_s19 = scalar_lea.vmem %s3193_s12, %s2246_s13 }
  0x14   : > { %vm457_vm0 = vcmask 523264   ;;  %vm460_vm1 = vcmask 517120   ;;  %v2684_v0 = vmov 0.0  }
  0x15   : > { %458 = vst.msk [vmem:[#allocation3] sm:$0xff] %vm457_vm0, %v2684_v0  ;;  %459 = vst.msk [vmem:[#allocation3 + $0x8] sm:$0xff] %vm457_vm0, %v2684_v0 }
  0x16   : > { %461 = vst.msk [vmem:[#allocation2] sm:$0x3] %vm460_vm1, %v2684_v0 }
  0x17 PF: > { %v467_v1 = vld [vmem:[%s3182_s1 + $0x18] sm:$0xff]  ;;  %v466_v2 = vld [vmem:[%s3182_s1 + $0x10] sm:$0xff]  ;;  %vm468_vm2 = vcmask 261120   ;;  %v462_v3 = vld [vmem:[%s441_s16] sm:$0xff]  ;;  %vm880_vm3 = vcmask 1041408   ;;  %vm629_vm4 = vcmask 523264  }
  0x18   : > { %2354 = vmatprep.subr.mxu0 %v467_v1  ;;  %v465_v4 = vld [vmem:[%s3182_s1 + $0x8] sm:$0xff]  ;;  %2362 = vmatprep.mubr.msk.f32.mxu0 %vm468_vm2, %v462_v3  ;;  %v464_v5 = vld [vmem:[%s3182_s1] sm:$0xff]  ;;  %v553_v7 = vld [vmem:[%s3183_s2 + $0x18] sm:$0xff]  ;;  %vm673_vm5 = vcmask 517120   ;;  %vm873_vm6 = vcmask 15360   ;;  %s2928_s21 = smov 0  }
  0x19   : > { %2355 = vmatpush3.msra.mxu0 %v467_v1  ;;  %2373 = vmatprep.mubr.msk.f32.mxu1 %vm468_vm2, %v462_v3  ;;  %v463_v6 = vld [vmem:[%s441_s16 + $0x8] sm:$0xff]  ;;  %v552_v8 = vld [vmem:[%s3183_s2 + $0x10] sm:$0xff]  ;;  %v698_v9 = vld [vmem:[%s3186_s5 + $0x38] sm:$0xff] }
  0x1a   : > { %2356 = vmatprep.subr.mxu0 %v466_v2  ;;  %2365 = vmatprep.subr.mxu1 %v553_v7  ;;  %v551_v10 = vld [vmem:[%s3183_s2 + $0x8] sm:$0xff]  ;;  %v697_v11 = vld [vmem:[%s3186_s5 + $0x30] sm:$0xff]  ;;  %v550_v13 = vld [vmem:[%s3183_s2] sm:$0xff] }
  0x1b   : > { %2357 = vmatpush3.msra.mxu0 %v466_v2  ;;  %2366 = vmatpush3.msra.mxu1 %v553_v7  ;;  %v696_v12 = vld [vmem:[%s3186_s5 + $0x28] sm:$0xff]  ;;  %v695_v14 = vld [vmem:[%s3186_s5 + $0x20] sm:$0xff]  ;;  %v787_v15 = vld [vmem:[%s3187_s6 + $0x38] sm:$0xff] }
  0x1c   : > { %2358 = vmatprep.subr.mxu0 %v465_v4  ;;  %2367 = vmatprep.subr.mxu1 %v552_v8  ;;  %v786_v16 = vld [vmem:[%s3187_s6 + $0x30] sm:$0xff]  ;;  %v694_v17 = vld [vmem:[%s3186_s5 + $0x18] sm:$0xff]  ;;  %v785_v18 = vld [vmem:[%s3187_s6 + $0x28] sm:$0xff] }
  0x1d   : > { %2359 = vmatpush3.msra.mxu0 %v465_v4  ;;  %2368 = vmatpush3.msra.mxu1 %v552_v8  ;;  %v693_v19 = vld [vmem:[%s3186_s5 + $0x10] sm:$0xff]  ;;  %v784_v20 = vld [vmem:[%s3187_s6 + $0x20] sm:$0xff]  ;;  %v692_v21 = vld [vmem:[%s3186_s5 + $0x8] sm:$0xff] }
  0x1e   : > { %2360 = vmatprep.subr.mxu0 %v464_v5  ;;  %2369 = vmatprep.subr.mxu1 %v551_v10  ;;  %v783_v22 = vld [vmem:[%s3187_s6 + $0x18] sm:$0xff]  ;;  %v691_v23 = vld [vmem:[%s3186_s5] sm:$0xff]  ;;  %v782_v24 = vld [vmem:[%s3187_s6 + $0x10] sm:$0xff] }
  0x1f   : > { %2361 = vmatpush3.msra.mxu0 %v464_v5  ;;  %2370 = vmatpush3.msra.mxu1 %v551_v10  ;;  %v781_v25 = vld [vmem:[%s3187_s6 + $0x8] sm:$0xff]  ;;  %v780_v26 = vld [vmem:[%s3187_s6] sm:$0xff]  ;;  %v989_v7 = vld [vmem:[#allocation3] sm:$0xff]  }
  0x20   : > { %2363 = vmatmul.mubr.msk.f32.vlgmr.msra.gmra.mxu0 %vm468_vm2, %v463_v6  ;;  %2376 = vmatprep.subr.mxu0 %v698_v9  ;;  %v865_v27 = vld [vmem:[%s3188_s7] sm:$0x3]  ;;  %v2258_v40 = vld [vmem:[%s3184_s3 + $0x2] ss:$0 sm:$0xff] }
  0x21   : > { %2377 = vmatpush3.msra.mxu0 %v698_v9  ;;  %2371 = vmatprep.subr.mxu1 %v550_v13  ;;  %v2256_v30 = vld [vmem:[%s3184_s3] ss:$0 sm:$0xff]  ;;  %v2257_v32 = vld [vmem:[%s3184_s3 + $0x1] ss:$0 sm:$0xff] }
  0x22   : > { %2378 = vmatprep.subr.mxu0 %v697_v11  ;;  %2372 = vmatpush3.msra.mxu1 %v550_v13  ;;  %v2255_v31 = vld [vmem:[%s3185_s4] ss:$0 sm:$0xff] }
  0x23   : > { %2379 = vmatpush3.msra.mxu0 %v697_v11  ;;  %2395 = vmatprep.subr.mxu1 %v787_v15  ;;  %v2912_v5 = vld [vmem:[%s3190_s9] sm:$0xff] }
  0x24   : > { %2380 = vmatprep.subr.mxu0 %v696_v12  ;;  %2374 = vmatmul.mubr.msk.f32.vlgmr.msra.gmra.mxu1 %vm468_vm2, %v463_v6  ;;  %v2917_v6 = vld [vmem:[%s3190_s9 + $0x8] sm:$0xff]  ;;  %v990_v8 = vld [vmem:[#allocation3 + $0x8] sm:$0xff]  }
  0x25   : > { %2381 = vmatpush3.msra.mxu0 %v696_v12  ;;  %2396 = vmatpush3.msra.mxu1 %v787_v15  ;;  %v2265_v9 = vld [vmem:[%s3189_s8] ss:$0 sm:$0xff] }
  0x26   : > { %2382 = vmatprep.subr.mxu0 %v695_v14  ;;  %2397 = vmatprep.subr.mxu1 %v786_v16 }
  0x27   : > { %2383 = vmatpush3.msra.mxu0 %v695_v14  ;;  %2398 = vmatpush3.msra.mxu1 %v786_v16 }
  0x28   : > { %2384 = vmatprep.subr.mxu0 %v694_v17  ;;  %2399 = vmatprep.subr.mxu1 %v785_v18 }
  0x29   : > { %2385 = vmatpush3.msra.mxu0 %v694_v17  ;;  %2400 = vmatpush3.msra.mxu1 %v785_v18 }
  0x2a   : > { %2386 = vmatprep.subr.mxu0 %v693_v19  ;;  %2401 = vmatprep.subr.mxu1 %v784_v20 }
  0x2b   : > { %2387 = vmatpush3.msra.mxu0 %v693_v19  ;;  %2402 = vmatpush3.msra.mxu1 %v784_v20 }
  0x2c   : > { %2388 = vmatprep.subr.mxu0 %v692_v21  ;;  %2403 = vmatprep.subr.mxu1 %v783_v22 }
  0x2d   : > { %2389 = vmatpush3.msra.mxu0 %v692_v21  ;;  %2404 = vmatpush3.msra.mxu1 %v783_v22 }
  0x2e   : > { %2390 = vmatprep.subr.mxu0 %v691_v23  ;;  %2405 = vmatprep.subr.mxu1 %v782_v24 }
  0x2f   : > { %2391 = vmatpush3.msra.mxu0 %v691_v23  ;;  %2406 = vmatpush3.msra.mxu1 %v782_v24 }
  0x30   : > { %2407 = vmatprep.subr.mxu1 %v781_v25  ;;  %2414 = vmatprep.subr.msk.mxu0 %vm880_vm3, %v865_v27 }
  0x31   : > { %2408 = vmatpush3.msra.mxu1 %v781_v25 }
  0x32   : > { %2409 = vmatprep.subr.mxu1 %v780_v26 }
  0x33   : > { %2410 = vmatpush3.msra.mxu1 %v780_v26 }
  0xe0   : > { %v2364_v28 = vpop.f32.mrf.mxu0 }
  0xe1   : > { %631 = vst.msk [vmem:[#allocation2 + $0xa] sm:$0xff] %vm629_vm4, %v2364_v28 }
  0xe2   : > { %v541_v29 = vpop.f32.mrf.mxu0 }
  0xe3   : > { %630 = vst.msk [vmem:[#allocation2 + $0x2] sm:$0xff] %vm629_vm4, %v541_v29 }
  0xe4   : > { %v2903_v63 = vpop.f32.mrf.mxu1 }
  0xe6   : > { %v2905_v0 = vpop.f32.mrf.mxu1 }
  0xe8   : > { %v672_v33 = vld [vmem:[#allocation2 + $0x10] sm:$0x3] }
  0xe9   : > { %v663_v42 = vld [vmem:[#allocation2 + $0xa] sm:$0xff] }
  0xea   : > { %v640_v34 = vld [vmem:[#allocation2] sm:$0xff]  ;;  %v641_v35 = vld [vmem:[#allocation2 + $0x8] sm:$0xff]  ;;  %v669_v49 = vmul.f32 %v2258_v40, %v663_v42 }
  0xeb   : > { %v651_v36 = vld [vmem:[#allocation2 + $0x1] sm:$0xff]  ;;  %v646_v37 = vmul.f32 %v2256_v30, %v640_v34  ;;  %v647_v38 = vmul.f32 %v2256_v30, %v641_v35  ;;  %v652_v39 = vld [vmem:[#allocation2 + $0x9] sm:$0xff] }
  0xec   : > { %674 = vst.msk [vmem:[#allocation2] sm:$0x3] %vm673_vm5, %v672_v33  ;;  %v662_v41 = vld [vmem:[#allocation2 + $0x2] sm:$0xff]  ;;  %v657_v45 = vmul.f32 %v2257_v32, %v651_v36  ;;  %v658_v46 = vmul.f32 %v2257_v32, %v652_v39 }
  0xed   : > { %v648_v43 = vadd.f32 %v2255_v31, %v646_v37  ;;  %v649_v44 = vadd.f32 %v2255_v31, %v647_v38  ;;  %v668_v48 = vmul.f32 %v2258_v40, %v662_v41 }
  0xef   : > { %v659_v47 = vadd.f32 %v657_v45, %v648_v43  ;;  %v660_v50 = vadd.f32 %v658_v46, %v649_v44 }
  0xf1   : > { %v670_v51 = vadd.f32 %v668_v48, %v659_v47  ;;  %v671_v52 = vadd.f32 %v669_v49, %v660_v50 }
  0xf3   : > { %v2259_v53 = vmul.f32 -1.442695, %v670_v51  ;;  %v2260_v54 = vmul.f32 -1.442695, %v671_v52 }
  0xf5   : > { %2563 = vpow2.f32 %v2259_v53 }
  0xf6   : > { %2565 = vpow2.f32 %v2260_v54 }
 0x102   : > { %v2564_v55 = vpop.eup %2563 }
 0x103   : > { %v2566_v56 = vpop.eup %2565  ;;  %v681_v57 = vadd.f32 1.0, %v2564_v55 }
 0x104   : > { %v682_v58 = vadd.f32 1.0, %v2566_v56 }
 0x105   : > { %2567 = vrcp.f32 %v681_v57 }
 0x106   : > { %2569 = vrcp.f32 %v682_v58 }
 0x112   : > { %v2568_v59 = vpop.eup %2567 }
 0x113   : > { %v2570_v60 = vpop.eup %2569  ;;  %v2886_v61 = vmul.f32 %v2568_v59, %v670_v51 }
 0x114   : > { %v2888_v62 = vmul.f32 %v2570_v60, %v671_v52 }
 0x115   : > { %689 = vst.msk [vmem:[#allocation5] sm:$0xff] %vm629_vm4, %v2886_v61  ;;  %2392 = vmatprep.mubr.msk.f32.mxu0 %vm629_vm4, %v2886_v61  ;;  %2411 = vmatprep.mubr.msk.f32.mxu1 %vm629_vm4, %v2886_v61 }
 0x116   : > { %690 = vst.msk [vmem:[#allocation5 + $0x8] sm:$0xff] %vm629_vm4, %v2888_v62  ;;  %2393 = vmatmul.mubr.msk.f32.vlgmr.msra.gmra.mxu0 %vm629_vm4, %v2888_v62  ;;  %2412 = vmatmul.mubr.msk.f32.vlgmr.msra.gmra.mxu1 %vm629_vm4, %v2888_v62 }
 0x117   : > { %2415 = vmatpush3.msk.msra.mxu0 %vm880_vm3, %v865_v27 }
 0x1d6   : > { %v2394_v1 = vpop.f32.mrf.mxu0  ;;  %v2413_v2 = vpop.f32.mrf.mxu1 }
 0x1d7   : > { %864 = vst.msk [vmem:[#allocation6 + $0x8] sm:$0xff] %vm468_vm2, %v2413_v2 }
 0x1d8   : > { %v771_v3 = vpop.f32.mrf.mxu0  ;;  %v854_v4 = vpop.f32.mrf.mxu1 }
 0x1d9   : > { %863 = vst.msk [vmem:[#allocation6] sm:$0xff] %vm468_vm2, %v854_v4  ;;  %2416 = vmatprep.mubr.msk.f32.mxu0 %vm873_vm6, %v771_v3 }
 0x1da   : > { %2417 = vmatmul.mubr.msk.f32.vlgmr.msra.gmra.mxu0 %vm873_vm6, %v2394_v1 }
 0x29a   : > { %v2418_v10 = vpop.f32.mrf.mxu0 }
 0x29b   : > { %v956_v11 = vadd.f32 %v2418_v10, %v2265_v9 }
 0x29c   : > { %v950_v12 = vpop.f32.mrf.mxu0 }
 0x29d   : > { %v963_v13 = vmul.f32 1.442695, %v956_v11  ;;  %v951_v14 = vadd.f32 %v2265_v9, %v950_v12  ;;  %vm960_vm8 = vcmp.gt.f32.partialorder %v956_v11, 20.0 }
 0x29f   : > { %2571 = vpow2.f32 %v963_v13  ;;  %v961_v15 = vmul.f32 1.442695, %v951_v14  ;;  %vm959_vm10 = vcmp.gt.f32.partialorder %v951_v14, 20.0 }
 0x2a1   : > { %2573 = vpow2.f32 %v961_v15 }
 0x2ac   : > { %v2572_v16 = vpop.eup %2571 }
 0x2ad   : > { %v974_v17 = vadd.f32 1.0, %v2572_v16  ;;  %v977_v20 = vmul.f32 -0.5, %v2572_v16  ;;  %v980_v23 = vand.u32 2147483647, %v2572_v16 }
 0x2ae   : > { %v2574_v18 = vpop.eup %2573 }
 0x2af   : > { %2575 = vlog2.f32 %v974_v17  ;;  %v965_v19 = vadd.f32 1.0, %v2574_v18  ;;  %v968_v21 = vmul.f32 -0.5, %v2574_v18  ;;  %v978_v22 = vadd.f32 1.0, %v977_v20 }
 0x2b0   : > { %v971_v26 = vand.u32 2147483647, %v2574_v18  ;;  %vm981_vm7 = vcmp.lt.f32.partialorder %v980_v23, 0.0004427343 }
 0x2b1   : > { %2577 = vlog2.f32 %v965_v19  ;;  %v969_v24 = vadd.f32 1.0, %v968_v21  ;;  %v979_v28 = vmul.f32 %v2572_v16, %v978_v22 }
 0x2b2   : > { %vm972_vm9 = vcmp.lt.f32.partialorder %v971_v26, 0.0004427343 }
 0x2b3   : > { %v970_v32 = vmul.f32 %v2574_v18, %v969_v24 }
 0x2bc   : > { %v2576_v25 = vpop.eup %2575 }
 0x2bd   : > { %v976_v27 = vmul.f32 0.6931472, %v2576_v25 }
 0x2be   : > { %v2578_v29 = vpop.eup %2577 }
 0x2bf   : > { %v982_v30 = vsel %vm981_vm7, %v979_v28, %v976_v27  ;;  %v967_v31 = vmul.f32 0.6931472, %v2578_v29 }
 0x2c0   : > { %v984_v33 = vsel %vm960_vm8, %v956_v11, %v982_v30 }
 0x2c1   : > { %986 = vst.msk [vmem:[#allocation4 + $0x8] sm:$0xff] %vm629_vm4, %v984_v33  ;;  %v973_v34 = vsel %vm972_vm9, %v970_v32, %v967_v31 }
 0x2c2   : > { %v983_v35 = vsel %vm959_vm10, %v951_v14, %v973_v34 }
 0x2c3   : > { %985 = vst.msk [vmem:[#allocation4] sm:$0xff] %vm629_vm4, %v983_v35 }
 0x2c4 LB: >> { %v1012_v36 = vlaneseq  ;;  %v2685_v37 = vmov 1966171168   ;;  %v2686_v39 = vmov 0.0   ;;  %s2942_s30 = sshll.u32 %s2682_s21, 3  ;;  %vm2687_vm11 = vmmov 0   ;;  %s2688_s17 = smov 112   ;;  %s2682_s21 = sphi %s2928_s21, %s996_s21   ;;  %v2678_v7 = vphi %v989_v7, %v3195_v7   ;;  %v2674_v8 = vphi %v990_v8, %v3194_v8  }
 0x2c5   : >> { %v1010_v38 = vunpack.c.l.s4 %v2685_v37  ;;  %2419 = vmatprep.subr.mxu0 %v2686_v39  ;;  %2426 = vmatprep.subr.mxu1 %v2686_v39  ;;  %s1004_s13 = scalar_lea.vmem [#allocation6], %s2942_s30  ;;  %s1002_s14 = scalar_lea.vmem [#allocation5], %s2942_s30  ;;  %vm1346_vm12 = vcmask 130048   ;;  %vm1993_vm13 = vcmask 1040384   ;;  %vm1996_vm14 = vcmask 1042432  }
 0x2c6   : >> { %v2944_v40 = vshrl.u32 %v1012_v36, 7  ;;  %v2947_v41 = vld [vmem:[%s1004_s13] sm:$0xff]  ;;  %s1000_s15 = scalar_lea.vmem [#allocation4], %s2942_s30  ;;  %2423 = vmatprep.mubr.msk.f32.mxu0 %vm2687_vm11, %v2686_v39  ;;  %2430 = vmatprep.mubr.msk.f32.mxu1 %vm2687_vm11, %v2686_v39  ;;  %vm1998_vm15 = vcmask 1043456   ;;  %vm2000_vm0 = vcmask 1044480   ;;  %vm2002_vm1 = vcmask 1045504  }
 0x2c7   : >> { %v1011_v44 = vunpack.c.0.s8 %v1010_v38  ;;  %v1003_v47 = vld [vmem:[%s1002_s14] sm:$0xff]  ;;  %v1423_v37 = vrot.slane %v2947_v41, 1  ;;  %vm2004_vm5 = vcmask 1046528   ;;  %s2006_s18 = scalar_lea.vmem [#allocation7], %s2942_s30  ;;  %s996_s21 = sadd.s32 1, %s2682_s21  }
 0x2c8   : >> { %v2950_v42 = vsub.s32 0, %v2944_v40  ;;  %v1208_v43 = vsub.s32 1, %v2944_v40  ;;  %v1219_v48 = vsub.s32 2, %v2944_v40  ;;  %v1230_v56 = vsub.s32 3, %v2944_v40  ;;  %p993_p8 = scmp.ge.s32.totalorder %s996_s21, 2  }
 0x2c9   : >> { %v1014_v50 = vsub.s32 %v1011_v44, %v2944_v40  ;;  %v1241_v13 = vsub.s32 4, %v2944_v40  ;;  %v1252_v24 = vsub.s32 5, %v2944_v40  ;;  %v1263_v38 = vsub.s32 6, %v2944_v40 }
 0x2ca   : >> { %v1209_v45 = vrot.slane %v2947_v41, %v1208_v43  ;;  %v1198_v46 = vrot.slane %v2947_v41, %v2950_v42  ;;  %v1001_v49 = vld [vmem:[%s1000_s15] sm:$0xff]  ;;  %v1220_v55 = vrot.slane %v2947_v41, %v1219_v48  ;;  %v1231_v12 = vrot.slane %v2947_v41, %v1230_v56 }
 0x2cb   : >> { %v1006_v51 = vmul.f32 %v1003_v47, %v1001_v49  ;;  %v1008_v52 = vcombine.high %v1001_v49, %v1001_v49  ;;  %v1015_v53 = vrot.slane %v1001_v49, %v1014_v50  ;;  %v1242_v23 = vrot.slane %v2947_v41, %v1241_v13 }
 0x2cc   : >> { %1215 = vbcast.lane.b32.xlu1 %v1209_v45, 264  ;;  %1204 = vbcast.lane.b32.xlu0 %v1198_v46, 264  ;;  %v1253_v31 = vrot.slane %v2947_v41, %v1252_v24  ;;  %v1264_v48 = vrot.slane %v2947_v41, %v1263_v38  ;;  %v1739_v56 = vrot.slane %v2947_v41, 5 }
 0x2cd   : >> { %v1153_v54 = vrot.slane %v1006_v51, %v1014_v50  ;;  %v1022_v57 = vrot.slane %v1008_v52, %v1014_v50  ;;  %v1023_v58 = vcombine.high %v1015_v53, %v1015_v53  ;;  %v1031_v59 = vrot.slane %v1015_v53, %v1014_v50 }
 0x2ce   : >> { %v1146_v3 = vcombine.high %v1006_v51, %v1006_v51  ;;  %v1581_v52 = vrot.slane %v2947_v41, 3  ;;  %v1502_v53 = vrot.slane %v2947_v41, 2 }
 0x2cf   : >> { %v1161_v60 = vcombine.high %v1153_v54, %v1153_v54  ;;  %v1038_v1 = vrot.slane %v1022_v57, %v1014_v50  ;;  %v1169_v2 = vrot.slane %v1153_v54, %v1014_v50  ;;  %v1045_v4 = vrot.slane %v1023_v58, %v1014_v50 }
 0x2d0   : >> { %1211 = vbcast.lane.b32.xlu1 %v1209_v45, 256  ;;  %1200 = vbcast.lane.b32.xlu0 %v1198_v46, 256  ;;  %v1053_v9 = vcombine.high %v1031_v59, %v1031_v59  ;;  %v2963_v10 = vrot.slane %v1031_v59, %v2950_v42  ;;  %v1024_v19 = vcombine.high %v1022_v57, %v1022_v57  ;;  %v1274_v54 = vsub.s32 7, %v2944_v40 }
 0x2d1   : >> { %v1183_v11 = vrot.slane %v1161_v60, %v1014_v50  ;;  %v2968_v14 = vrot.slane %v1038_v1, %v2950_v42  ;;  %v1055_v15 = vcombine.high %v1045_v4, %v1045_v4  ;;  %v2971_v16 = vrot.slane %v1045_v4, %v2950_v42 }
 0x2d2   : >> { %v2974_v17 = vrot.slane %v1053_v9, %v2950_v42  ;;  %v2980_v20 = vrot.slane %v1169_v2, %v2950_v42  ;;  %v1191_v21 = vcombine.high %v1169_v2, %v1169_v2  ;;  %v1160_v22 = vrot.slane %v1146_v3, %v1014_v50 }
 0x2d3   : >> { %v2977_v18 = vrot.slane %v1183_v11, %v2950_v42  ;;  %v2985_v25 = vrot.slane %v1055_v15, %v2950_v42  ;;  %v1052_v27 = vrot.slane %v1024_v19, %v1014_v50  ;;  %v1193_v28 = vcombine.high %v1183_v11, %v1183_v11 }
 0x2d4   : >> { %1222 = vbcast.lane.b32.xlu1 %v1220_v55, 256  ;;  %1226 = vbcast.lane.b32.xlu0 %v1220_v55, 264  ;;  %v2988_v26 = vrot.slane %v1191_v21, %v2950_v42  ;;  %v1054_v29 = vcombine.high %v1038_v1, %v1038_v1  ;;  %v1176_v30 = vrot.slane %v1160_v22, %v1014_v50  ;;  %v1660_v57 = vrot.slane %v2947_v41, 4 }
 0x2d5   : >> { %v2992_v32 = vrot.slane %v1193_v28, %v2950_v42  ;;  %v2998_v34 = vrot.slane %v1052_v27, %v2950_v42  ;;  %v1162_v35 = vcombine.high %v1160_v22, %v1160_v22  ;;  %v1056_v43 = vcombine.high %v1052_v27, %v1052_v27 }
 0x2d6   : >> { %v2995_v33 = vrot.slane %v1176_v30, %v2950_v42  ;;  %v3001_v36 = vrot.slane %v1054_v29, %v2950_v42  ;;  %v1192_v45 = vcombine.high %v1176_v30, %v1176_v30  ;;  %v1275_v55 = vrot.slane %v2947_v41, %v1274_v54 }
 0x2d7   : >> { %v1190_v44 = vrot.slane %v1162_v35, %v1014_v50  ;;  %v3018_v49 = vrot.slane %v1056_v43, %v2950_v42  ;;  %v1818_v58 = vrot.slane %v2947_v41, 6  ;;  %v1098_v40 = vmul.f32 %v2963_v10, %v2917_v6 }
 0x2d8   : >> { %1233 = vbcast.lane.b32.xlu1 %v1231_v12, 256  ;;  %1237 = vbcast.lane.b32.xlu0 %v1231_v12, 264  ;;  %v3013_v47 = vrot.slane %v1192_v45, %v2950_v42  ;;  %v1097_v59 = vmul.f32 %v2963_v10, %v2912_v5  ;;  %v1100_v1 = vmul.f32 %v2971_v16, %v2917_v6 }
 0x2d9   : >> { %v3010_v46 = vrot.slane %v1190_v44, %v2950_v42  ;;  %v1194_v50 = vcombine.high %v1190_v44, %v1190_v44  ;;  %v1115_v60 = vmul.f32 1.442695, %v1098_v40  ;;  %v1099_v3 = vmul.f32 %v2971_v16, %v2912_v5 }
 0x2da   : >> { %v1113_v2 = vmul.f32 1.442695, %v1097_v59  ;;  %v1119_v4 = vmul.f32 1.442695, %v1100_v1  ;;  %v1101_v11 = vmul.f32 %v2974_v17, %v2912_v5  ;;  %v1104_v12 = vmul.f32 %v2985_v25, %v2917_v6 }
 0x2db   : >> { %v3021_v51 = vrot.slane %v1194_v50, %v2950_v42  ;;  %v1897_v42 = vrot.slane %v2947_v41, 7  ;;  %2580 = vpow2.f32 %v1115_v60  ;;  %v1117_v9 = vmul.f32 1.442695, %v1099_v3 }
 0x2dc   : >> { %1244 = vbcast.lane.b32.xlu1 %v1242_v23, 256  ;;  %1248 = vbcast.lane.b32.xlu0 %v1242_v23, 264  ;;  %2582 = vpow2.f32 %v1113_v2  ;;  %v1121_v13 = vmul.f32 1.442695, %v1101_v11  ;;  %v1103_v15 = vmul.f32 %v2985_v25, %v2912_v5  ;;  %v1127_v16 = vmul.f32 1.442695, %v1104_v12 }
 0x2dd   : >> { %2584 = vpow2.f32 %v1119_v4  ;;  %v1106_v19 = vmul.f32 %v2968_v14, %v2917_v6  ;;  %v1105_v22 = vmul.f32 %v2968_v14, %v2912_v5  ;;  %v1108_v24 = vmul.f32 %v2998_v34, %v2917_v6 }
 0x2de   : >> { %2586 = vpow2.f32 %v1117_v9  ;;  %v1107_v35 = vmul.f32 %v2998_v34, %v2912_v5  ;;  %v1110_v38 = vmul.f32 %v3001_v36, %v2917_v6 }
 0x2df   : >> { %v1131_v23 = vmul.f32 1.442695, %v1106_v19  ;;  %v1129_v30 = vmul.f32 1.442695, %v1105_v22 }
 0x2e0   : >> { %1255 = vbcast.lane.b32.xlu1 %v1253_v31, 256  ;;  %1259 = vbcast.lane.b32.xlu0 %v1253_v31, 264 }
 0x2e4   : >> { %1424 = vrot.lane.b32.xlu1 %v1423_v37, %s2688_s17  ;;  %1344 = vrot.lane.b32.xlu0 %v2947_v41, %s2688_s17  ;;  %v1102_v41 = vmul.f32 %v2974_v17, %v2917_v6  ;;  %v1125_v17 = vmul.f32 1.442695, %v1103_v15  ;;  %v1135_v37 = vmul.f32 1.442695, %v1108_v24 }
 0x2e6   : >> { %v1123_v10 = vmul.f32 1.442695, %v1102_v41 }
 0x2e8   : >> { %1266 = vbcast.lane.b32.xlu1 %v1264_v48, 256  ;;  %1270 = vbcast.lane.b32.xlu0 %v1264_v48, 264  ;;  %2588 = vpow2.f32 %v1123_v10  ;;  %v2581_v21 = vpop.eup %2580  ;;  %v1109_v48 = vmul.f32 %v3001_v36, %v2912_v5  ;;  %v1111_v36 = vmul.f32 %v3018_v49, %v2912_v5  ;;  %v2044_v5 = vld [vmem:[%s3192_s11 + $0x28] sm:$0xff] (%p993_p8) }
 0x2e9   : >> { %2590 = vpow2.f32 %v1121_v13  ;;  %v1340_v27 = vmul.f32 %v2674_v8, %v2581_v21  ;;  %v2583_v28 = vpop.eup %2582 }
 0x2ea   : >> { %2592 = vpow2.f32 %v1127_v16  ;;  %v2585_v14 = vpop.eup %2584  ;;  %v1339_v43 = vmul.f32 %v2678_v7, %v2583_v28  ;;  %v1137_v40 = vmul.f32 1.442695, %v1109_v48 }
 0x2eb   : >> { %2594 = vpow2.f32 %v1125_v17  ;;  %v2587_v54 = vpop.eup %2586 }
 0x2ec   : >> { %1582 = vrot.lane.b32.xlu1 %v1581_v52, %s2688_s17  ;;  %1503 = vrot.lane.b32.xlu0 %v1502_v53, %s2688_s17  ;;  %2596 = vpow2.f32 %v1131_v23  ;;  %v1133_v53 = vmul.f32 1.442695, %v1107_v35 }
 0x2ed   : >> { %2598 = vpow2.f32 %v1129_v30 }
 0x2ee   : >> { %2600 = vpow2.f32 %v1135_v37 }
 0x2ef   : >> { %2602 = vpow2.f32 %v1133_v53 }
 0x2f0   : >> { %1277 = vbcast.lane.b32.xlu1 %v1275_v55, 256  ;;  %1281 = vbcast.lane.b32.xlu0 %v1275_v55, 264  ;;  %v1139_v55 = vmul.f32 1.442695, %v1110_v38 }
 0x2f2   : >> { %2604 = vpow2.f32 %v1139_v55 }
 0x2f3   : >> { %2606 = vpow2.f32 %v1137_v40 }
 0x2f4   : >> { %1740 = vrot.lane.b32.xlu1 %v1739_v56, %s2688_s17  ;;  %1661 = vrot.lane.b32.xlu0 %v1660_v57, %s2688_s17 }
 0x2f5   : >> { %v2589_v7 = vpop.eup %2588 }
 0x2f6   : >> { %v2591_v2 = vpop.eup %2590 }
 0x2f7   : >> { %v2593_v4 = vpop.eup %2592 }
 0x2f8   : >> { %1898 = vrot.lane.b32.xlu1 %v1897_v42, %s2688_s17  ;;  %1819 = vrot.lane.b32.xlu0 %v1818_v58, %s2688_s17  ;;  %v2595_v16 = vpop.eup %2594 }
 0x2f9   : >> { %v2597_v21 = vpop.eup %2596 }
 0x33e   : >> { %v1216_v25 = vpop.permute.xlu1 %1215  ;;  %v1205_v29 = vpop.permute.xlu0 %1204 }
 0x33f   : >> { %v1324_v31 = vmul.f32 %v2980_v20, %v1205_v29  ;;  %v1326_v50 = vmul.f32 %v2977_v18, %v1216_v25 }
 0x341   : >> { %v1342_v44 = vadd.f32 %v1340_v27, %v1324_v31  ;;  %v2599_v27 = vpop.eup %2598 }
 0x342   : >> { %v1212_v8 = vpop.permute.xlu1 %1211  ;;  %v1201_v45 = vpop.permute.xlu0 %1200 }
 0x343   : >> { %v1323_v52 = vmul.f32 %v2980_v20, %v1201_v45  ;;  %2420 = vmatpush3.msra.mxu0 %v1342_v44  ;;  %v1420_v34 = vmul.f32 %v2585_v14, %v1342_v44  ;;  %v1112_v20 = vmul.f32 %v3018_v49, %v2917_v6  ;;  %v1325_v59 = vmul.f32 %v2977_v18, %v1212_v8  ;;  %v2601_v30 = vpop.eup %2600  ;;  %v2043_v6 = vld [vmem:[%s3192_s11 + $0x20] sm:$0xff] (%p993_p8) }
 0x344   : >> { %2421 = vmatprep.subr.mxu0 %v2686_v39  ;;  %v1141_v18 = vmul.f32 1.442695, %v1111_v36  ;;  %v2603_v8 = vpop.eup %2602 }
 0x345   : >> { %v1341_v56 = vadd.f32 %v1339_v43, %v1323_v52  ;;  %v1422_v57 = vadd.f32 %v1420_v34, %v1326_v50  ;;  %v1143_v15 = vmul.f32 1.442695, %v1112_v20  ;;  %v2605_v48 = vpop.eup %2604 }
 0x346   : >> { %v1223_v42 = vpop.permute.xlu1 %1222  ;;  %v1227_v58 = vpop.permute.xlu0 %1226  ;;  %2608 = vpow2.f32 %v1141_v18 }
 0x347   : >> { %v1419_v60 = vmul.f32 %v2587_v54, %v1341_v56  ;;  %v1328_v1 = vmul.f32 %v2988_v26, %v1227_v58  ;;  %2422 = vmatpush3.msra.mxu0 %v1341_v56  ;;  %2427 = vmatpush3.msra.mxu1 %v1422_v57  ;;  %v1499_v3 = vmul.f32 %v2589_v7, %v1422_v57  ;;  %2610 = vpow2.f32 %v1143_v15  ;;  %v2607_v53 = vpop.eup %2606 }
 0x348   : >> { %2428 = vmatprep.subr.mxu1 %v2686_v39  ;;  %2433 = vmatprep.subr.mxu0 %v2686_v39  ;;  %v1327_v10 = vmul.f32 %v2988_v26, %v1223_v42 }
 0x349   : >> { %v1421_v41 = vadd.f32 %v1419_v60, %v1325_v59  ;;  %v1501_v9 = vadd.f32 %v1499_v3, %v1328_v1 }
 0x34a   : >> { %v1234_v11 = vpop.permute.xlu1 %1233  ;;  %v1238_v49 = vpop.permute.xlu0 %1237 }
 0x34b   : >> { %v1498_v12 = vmul.f32 %v2591_v2, %v1421_v41  ;;  %v1330_v13 = vmul.f32 %v2992_v32, %v1238_v49  ;;  %2429 = vmatpush3.msra.mxu1 %v1421_v41  ;;  %v1578_v19 = vmul.f32 %v2593_v4, %v1501_v9  ;;  %v1329_v28 = vmul.f32 %v2992_v32, %v1234_v11 }
 0x34c   : >> { %2440 = vmatprep.subr.mxu1 %v2686_v39 }
 0x34d   : >> { %v1500_v22 = vadd.f32 %v1498_v12, %v1327_v10  ;;  %v1580_v17 = vadd.f32 %v1578_v19, %v1330_v13 }
 0x34e   : >> { %v1245_v23 = vpop.permute.xlu1 %1244  ;;  %v1249_v24 = vpop.permute.xlu0 %1248 }
 0x34f   : >> { %v1577_v25 = vmul.f32 %v2595_v16, %v1500_v22  ;;  %v1332_v26 = vmul.f32 %v2995_v33, %v1249_v24  ;;  %v1657_v29 = vmul.f32 %v2597_v21, %v1580_v17  ;;  %v1331_v38 = vmul.f32 %v2995_v33, %v1245_v23 }
 0x351   : >> { %v1579_v31 = vadd.f32 %v1577_v25, %v1329_v28  ;;  %v1659_v35 = vadd.f32 %v1657_v29, %v1332_v26 }
 0x352   : >> { %v1256_v14 = vpop.permute.xlu1 %1255  ;;  %v1260_v37 = vpop.permute.xlu0 %1259 }
 0x353   : >> { %v1656_v43 = vmul.f32 %v2599_v27, %v1579_v31  ;;  %v1334_v44 = vmul.f32 %v3010_v46, %v1260_v37  ;;  %v1736_v45 = vmul.f32 %v2601_v30, %v1659_v35  ;;  %v1333_v54 = vmul.f32 %v3010_v46, %v1256_v14  ;;  %v2609_v42 = vpop.eup %2608 }
 0x354   : >> { %v2611_v36 = vpop.eup %2610 }
 0x355   : >> { %v1658_v32 = vadd.f32 %v1656_v43, %v1331_v38  ;;  %v1738_v50 = vadd.f32 %v1736_v45, %v1334_v44 }
 0x356   : >> { %v1425_v52 = vpop.permute.xlu1 %1424  ;;  %v1345_v34 = vpop.permute.xlu0 %1344 }
 0x357   : >> { %v1735_v55 = vmul.f32 %v2603_v8, %v1658_v32  ;;  %2424 = vmatmul.mubr.msk.f32.vlgmr.msra.gmra.mxu0 %vm1346_vm12, %v1345_v34  ;;  %2431 = vmatmul.mubr.msk.f32.vlgmr.msra.gmra.mxu1 %vm1346_vm12, %v1425_v52  ;;  %v1815_v33 = vmul.f32 %v2605_v48, %v1738_v50 }
 0x358   : >> { %2434 = vmatpush3.msra.mxu0 %v1501_v9  ;;  %2441 = vmatpush3.msra.mxu1 %v1580_v17 }
 0x359   : >> { %v1737_v7 = vadd.f32 %v1735_v55, %v1333_v54  ;;  %2435 = vmatprep.subr.mxu0 %v2686_v39  ;;  %2442 = vmatprep.subr.mxu1 %v2686_v39  ;;  %v2045_v54 = vld [vmem:[%s3192_s11 + $0x30] sm:$0xff] (%p993_p8)  ;;  %v2279_v55 = vmul.f32 (%p993_p8), -1.442695, %v2905_v0 }
 0x35a   : >> { %2436 = vmatpush3.msra.mxu0 %v1500_v22  ;;  %2443 = vmatpush3.msra.mxu1 %v1579_v31  ;;  %v1267_v56 = vpop.permute.xlu1 %1266  ;;  %v1271_v57 = vpop.permute.xlu0 %1270 }
 0x35b   : >> { %v1335_v46 = vmul.f32 %v3013_v47, %v1267_v56  ;;  %v1814_v58 = vmul.f32 %v2607_v53, %v1737_v7  ;;  %v1336_v40 = vmul.f32 %v3013_v47, %v1271_v57  ;;  %2437 = vmatprep.mubr.msk.f32.mxu0 %vm2687_vm11, %v2686_v39  ;;  %2444 = vmatprep.mubr.msk.f32.mxu1 %vm2687_vm11, %v2686_v39  ;;  %v2046_v53 = vld [vmem:[%s3192_s11 + $0x38] sm:$0xff] (%p993_p8)  ;;  %2612 = vpow2.f32 (%p993_p8), %v2279_v55  ;;  %v2041_v56 = vld [vmem:[%s3192_s11 + $0x10] sm:$0xff] (%p993_p8)  ;;  %v2040_v57 = vld [vmem:[%s3192_s11 + $0x8] sm:$0xff] (%p993_p8) }
 0x35c   : >> { %2447 = vmatprep.subr.mxu0 %v2686_v39  ;;  %2454 = vmatprep.subr.mxu1 %v2686_v39 }
 0x35d   : >> { %v1816_v20 = vadd.f32 %v1814_v58, %v1335_v46  ;;  %v1817_v59 = vadd.f32 %v1815_v33, %v1336_v40  ;;  %v2280_v33 = vmul.f32 (%p993_p8), -1.442695, %v2903_v63 }
 0x35e   : >> { %v1583_v60 = vpop.permute.xlu1 %1582  ;;  %v1504_v1 = vpop.permute.xlu0 %1503 }
 0x35f   : >> { %2438 = vmatmul.mubr.msk.f32.vlgmr.msra.gmra.mxu0 %vm1346_vm12, %v1504_v1  ;;  %2445 = vmatmul.mubr.msk.f32.vlgmr.msra.gmra.mxu1 %vm1346_vm12, %v1583_v60  ;;  %v1893_v47 = vmul.f32 %v2609_v42, %v1816_v20  ;;  %v1894_v2 = vmul.f32 %v2611_v36, %v1817_v59  ;;  %2614 = vpow2.f32 (%p993_p8), %v2280_v33  ;;  %v2039_v42 = vld [vmem:[%s3192_s11] sm:$0xff] (%p993_p8) }
 0x360   : >> { %2448 = vmatpush3.msra.mxu0 %v1659_v35  ;;  %2455 = vmatpush3.msra.mxu1 %v1738_v50 }
 0x361   : >> { %2449 = vmatprep.subr.mxu0 %v2686_v39  ;;  %2456 = vmatprep.subr.mxu1 %v2686_v39 }
 0x362   : >> { %2450 = vmatpush3.msra.mxu0 %v1658_v32  ;;  %2457 = vmatpush3.msra.mxu1 %v1737_v7  ;;  %v1278_v3 = vpop.permute.xlu1 %1277  ;;  %v1282_v4 = vpop.permute.xlu0 %1281 }
 0x363   : >> { %v1337_v41 = vmul.f32 %v3021_v51, %v1278_v3  ;;  %v1338_v9 = vmul.f32 %v3021_v51, %v1282_v4  ;;  %2451 = vmatprep.mubr.msk.f32.mxu0 %vm2687_vm11, %v2686_v39  ;;  %2458 = vmatprep.mubr.msk.f32.mxu1 %vm2687_vm11, %v2686_v39 }
 0x364   : >> { %2461 = vmatprep.subr.mxu0 %v2686_v39  ;;  %2468 = vmatprep.subr.mxu1 %v2686_v39 }
 0x365   : >> { %v1895_v11 = vadd.f32 %v1893_v47, %v1337_v41   ;;  %v1896_v49 = vadd.f32 %v1894_v2, %v1338_v9  }
 0x366   : >> { %v1741_v18 = vpop.permute.xlu1 %1740  ;;  %v1662_v10 = vpop.permute.xlu0 %1661 }
 0x367   : >> { %2452 = vmatmul.mubr.msk.f32.vlgmr.msra.gmra.mxu0 %vm1346_vm12, %v1662_v10  ;;  %2459 = vmatmul.mubr.msk.f32.vlgmr.msra.gmra.mxu1 %vm1346_vm12, %v1741_v18  ;;  %v3195_v7 = vmov %v1895_v11  ;;  %2008 = vst.msk [vmem:[#allocation3] sm:$0xff] (%p993_p8), %vm629_vm4, %v1895_v11  ;;  %2009 = vst.msk [vmem:[#allocation3 + $0x8] sm:$0xff] (%p993_p8), %vm629_vm4, %v1896_v49 }
 0x368   : >> { %2462 = vmatpush3.msra.mxu0 %v1817_v59  ;;  %2469 = vmatpush3.msra.mxu1 %v1896_v49  ;;  %v2042_v7 = vld [vmem:[%s3192_s11 + $0x18] sm:$0xff] (%p993_p8)  ;;  %v2613_v46 = vpop.eup (%p993_p8), %2612 }
 0x369   : >> { %2463 = vmatprep.subr.mxu0 %v2686_v39  ;;  %2470 = vmatprep.subr.mxu1 %v2686_v39  ;;  %v2029_v40 = vadd.f32 (%p993_p8), 1.0, %v2613_v46 }
 0x36a   : >> { %2464 = vmatpush3.msra.mxu0 %v1816_v20  ;;  %2471 = vmatpush3.msra.mxu1 %v1895_v11  ;;  %v1899_v51 = vpop.permute.xlu1 %1898  ;;  %v1820_v12 = vpop.permute.xlu0 %1819  ;;  %v2278_v20 = vld [vmem:[%s3191_s10] ss:$0 sm:$0xff] (%p993_p8) }
 0x36b   : >> { %2465 = vmatprep.mubr.msk.f32.mxu0 %vm2687_vm11, %v2686_v39  ;;  %2472 = vmatprep.mubr.msk.f32.mxu1 %vm2687_vm11, %v2686_v39  ;;  %2616 = vrcp.f32 (%p993_p8), %v2029_v40  ;;  %v2019_v59 = vmul.f32 (%p993_p8), %v2278_v20, %v2886_v61  ;;  %v2020_v1 = vmul.f32 (%p993_p8), %v2278_v20, %v2888_v62 }
 0x36c   : >> { %2466 = vmatmul.mubr.msk.f32.vlgmr.msra.gmra.mxu0 %vm1346_vm12, %v1820_v12  ;;  %2473 = vmatmul.mubr.msk.f32.vlgmr.msra.gmra.mxu1 %vm1346_vm12, %v1899_v51  ;;  %v2615_v58 = vpop.eup (%p993_p8), %2614 }
 0x36d   : > { %2475 = vmatprep.subr.mxu0 (%p993_p8), %v2046_v53  ;;  %v2030_v36 = vadd.f32 (%p993_p8), 1.0, %v2615_v58 }
 0x36e   : > { %2476 = vmatpush3.msra.mxu0 (%p993_p8), %v2046_v53 }
 0x36f   : > { %2477 = vmatprep.subr.mxu0 (%p993_p8), %v2045_v54  ;;  %2618 = vrcp.f32 (%p993_p8), %v2030_v36 }
 0x370   : > { %2478 = vmatpush3.msra.mxu0 (%p993_p8), %v2045_v54 }
 0x371   : > { %2479 = vmatprep.subr.mxu0 (%p993_p8), %v2044_v5 }
 0x372   : > { %2480 = vmatpush3.msra.mxu0 (%p993_p8), %v2044_v5 }
 0x373   : > { %2481 = vmatprep.subr.mxu0 (%p993_p8), %v2043_v6 }
 0x374   : > { %2482 = vmatpush3.msra.mxu0 (%p993_p8), %v2043_v6 }
 0x375   : > { %2483 = vmatprep.subr.mxu0 (%p993_p8), %v2042_v7 }
 0x376   : > { %2484 = vmatpush3.msra.mxu0 (%p993_p8), %v2042_v7 }
 0x377   : > { %2485 = vmatprep.subr.mxu0 (%p993_p8), %v2041_v56 }
 0x378   : > { %2486 = vmatpush3.msra.mxu0 (%p993_p8), %v2041_v56  ;;  %v2617_v3 = vpop.eup (%p993_p8), %2616 }
 0x379   : > { %2487 = vmatprep.subr.mxu0 (%p993_p8), %v2040_v57  ;;  %v2035_v9 = vmul.f32 (%p993_p8), %v2617_v3, %v2905_v0 }
 0x37a   : > { %2488 = vmatpush3.msra.mxu0 (%p993_p8), %v2040_v57 }
 0x37b   : > { %2489 = vmatprep.subr.mxu0 (%p993_p8), %v2039_v42 }
 0x37c   : > { %2490 = vmatpush3.msra.mxu0 (%p993_p8), %v2039_v42  ;;  %v2619_v41 = vpop.eup (%p993_p8), %2618 }
 0x37d   : > { %v2036_v11 = vmul.f32 (%p993_p8), %v2619_v41, %v2903_v63 }
 0x417   : >> { %v1415_v13 = vpop.f32.mrf.mxu0  ;;  %v1494_v15 = vpop.f32.mrf.mxu1 }
 0x418   : >> { %v1973_v24 = vrot.slane %v1494_v15, 7 }
 0x419   : >> { %v2425_v16 = vpop.f32.mrf.mxu0  ;;  %v2432_v19 = vpop.f32.mrf.mxu1 }
 0x41a   : >> { %v1994_v28 = vsel %vm1993_vm13, %v1415_v13, %v1973_v24 }
 0x41f   : >> { %v1573_v21 = vpop.f32.mrf.mxu0  ;;  %v1652_v22 = vpop.f32.mrf.mxu1 }
 0x420   : >> { %v1976_v27 = vrot.slane %v1573_v21, 6  ;;  %v1979_v25 = vrot.slane %v1652_v22, 5 }
 0x421   : >> { %v2439_v17 = vpop.f32.mrf.mxu0  ;;  %v2446_v23 = vpop.f32.mrf.mxu1 }
 0x422   : >> { %v1995_v26 = vsel %vm880_vm3, %v1994_v28, %v1976_v27 }
 0x423   : >> { %v1997_v14 = vsel %vm1996_vm14, %v1995_v26, %v1979_v25 }
 0x427   : >> { %v1731_v39 = vpop.f32.mrf.mxu0  ;;  %v1810_v29 = vpop.f32.mrf.mxu1 }
 0x428   : >> { %v1982_v30 = vrot.slane %v1731_v39, 4  ;;  %v1985_v37 = vrot.slane %v1810_v29, 3 }
 0x429   : >> { %v2453_v31 = vpop.f32.mrf.mxu0  ;;  %v2460_v35 = vpop.f32.mrf.mxu1 }
 0x42a   : >> { %v1999_v38 = vsel %vm1998_vm15, %v1997_v14, %v1982_v30 }
 0x42b   : >> { %v2001_v48 = vsel %vm2000_vm0, %v1999_v38, %v1985_v37 }
 0x42c   : >> { %v1889_v43 = vpop.f32.mrf.mxu0  ;;  %v1968_v44 = vpop.f32.mrf.mxu1 }
 0x42d   : >> { %v1988_v8 = vrot.slane %v1889_v43, 2  ;;  %v1991_v45 = vrot.slane %v1968_v44, 1  ;;  %995 = sbr.rel (!%p993_p8) target bundleno = 708 (0x2c4), region = 113 }
 0x42e   : >> { %v2467_v32 = vpop.f32.mrf.mxu0  ;;  %v2474_v50 = vpop.f32.mrf.mxu1 }
 0x42f   : >> { %v2003_v52 = vsel %vm2002_vm1, %v2001_v48, %v1988_v8  ;;  %v3194_v8 = vmov %v1896_v49 }
 0x430   : >> { %v2005_v34 = vsel %vm2004_vm5, %v2003_v52, %v1991_v45 }
 0x431   : >> { %2007 = vst.msk [vmem:[%s2006_s18] sm:$0xff] %vm629_vm4, %v2005_v34 }
 0x438   : > { %v2010_v60 = vld [vmem:[#allocation7] sm:$0xff]  ;;  %v2011_v47 = vld [vmem:[#allocation7 + $0x8] sm:$0xff] }
 0x439   : > { %v2021_v2 = vadd.f32 %v2019_v59, %v2010_v60  ;;  %v2022_v4 = vadd.f32 %v2020_v1, %v2011_v47 }
 0x43b   : > { %v2037_v49 = vmul.f32 %v2035_v9, %v2021_v2  ;;  %v2038_v18 = vmul.f32 %v2036_v11, %v2022_v4 }
 0x43d   : > { %2491 = vmatprep.mubr.msk.f32.mxu0 %vm629_vm4, %v2037_v49 }
 0x43e   : > { %2492 = vmatmul.mubr.msk.f32.vlgmr.msra.gmra.mxu0 %vm629_vm4, %v2038_v18 }
 0x4fe   : > { %v2493_v61 = vpop.f32.mrf.mxu0 }
 0x4ff   : > { %2129 = vst.msk [vmem:[%s2790_s19 + $0x8] sm:$0xff] %vm468_vm2, %v2493_v61 }
 0x500   : > { %v2119_v10 = vpop.f32.mrf.mxu0 }
 0x501   : > { %2128 = vst.msk [vmem:[%s2790_s19] sm:$0xff] %vm468_vm2, %v2119_v10 }
 0x502 PF: > { %s22_s25 = sadd.s32 1, %s2670_s25   ;;  %s3196_s21 = smov %s2662_s23 }
 0x503   : > { %p19_p9 = scmp.ge.s32.totalorder %s22_s25, 10   ;;  %s3197_s22 = smov %s2666_s24 }
 0x504   : > { %s3198_s23 = smov %s3201_s26  ;;  %s3199_s24 = smov %s3205_s27 }
 0x505   :  { %21 = sbr.rel (!%p19_p9) target bundleno = 3 (0x3), region = 124 }

</bundles_post_ra>
